<compile_context>
chip_gen: v7x
topology: tpu7x:2x2x1
jax: 0.10.0
libtpu: 0.0.40
codegen_flags: <defaults>
</compile_context>

<pallas_src>
import math
from functools import partial

import jax
import jax.numpy as jnp
from jax.experimental import pallas as pl
from jax.experimental.pallas import tpu as pltpu

_NEG_INF = -1e30  # finite "minus infinity" -> exp underflows to exactly 0, no NaNs


def _sa_gcn_kernel(adj_ref, bias_ref, x_ref, o_ref, *, feat, matmul_dtype):
    """One grid step: TB packed super-slabs (each = G stacked (N, F) slabs).

    adj_ref:  (SW, SW)     block-diagonally tiled normalized adjacency (resident)
    bias_ref: (SW, SW)     0 on diagonal NxN blocks, -1e30 off-block (resident)
    x_ref:    (TB, SW, F)  G node-feature slabs stacked along the node axis
    o_ref:    (TB, SW, F)  output
    """
    x = x_ref[...]                                   # (TB, SW, F) f32
    adj = adj_ref[...]                               # (SW, SW)
    bias = bias_ref[...]                             # (SW, SW)
    inv_sqrt_f = 1.0 / math.sqrt(feat)

    xm = x.astype(matmul_dtype)                      # optional bf16 MXU feed (f32 by default)

    # Block-diagonal attention: one full-width MXU matmul per super-slab
    # instead of G tiny (N, N) ones.  Cross-slab scores are pushed to -1e30 by
    # `bias`, so each slab's softmax row normalizes over its own N nodes only.
    score = jnp.einsum("bnf,bmf->bnm", xm, xm,
                       preferred_element_type=jnp.float32)
    score = score * inv_sqrt_f + bias[None, :, :]

    # Numerically stable row softmax.  Exact reciprocal (parity with PyTorch);
    # the module's trailing 1/sqrt(F) is folded into the same (TB, SW, 1) term
    # instead of a separate (TB, SW, SW) multiply.
    m = jnp.max(score, axis=-1, keepdims=True)
    p = jnp.exp(score - m)
    denom = jnp.sum(p, axis=-1, keepdims=True)
    attn = p * (pl.reciprocal(denom) * inv_sqrt_f)

    # relu( (norm_Adj(block-diag) * attn) @ x ).  Off-diagonal blocks of `w`
    # are exactly zero, so the single wide matmul equals the per-slab result.
    w = (adj[None, :, :] * attn).astype(matmul_dtype)
    out = jnp.einsum("bnm,bmf->bnf", w, xm,
                     preferred_element_type=jnp.float32)
    o_ref[...] = jnp.maximum(out, 0.0).astype(o_ref.dtype)


def _tpu_info():
    """Best-effort chip introspection; safe conservative defaults if unavailable."""
    vmem_cap = 64 * 1024 * 1024      # conservative default (v7x per-core VMEM)
    mxu_width = 256                  # v6e / v7x MXU tile width
    two_core = False                 # v7x has 2 TensorCores per chip
    try:
        vmem_cap = int(pltpu.get_tpu_info().vmem_capacity_bytes)
    except Exception:
        pass
    try:
        kind = jax.devices()[0].device_kind.lower()
        if "v5" in kind or "v4" in kind:
            mxu_width = 128          # 128-wide MXU generations
        if "v7" in kind:
            two_core = True
    except Exception:
        pass
    return vmem_cap, mxu_width, two_core


def spatial_attention_scaled_gcn(x, norm_adj, *, use_bf16_matmul=False):
    """x: (B, T, N, F) float32; norm_adj: (N, N) float32 -> (B, T, N, F)."""
    B, T, N, F = x.shape
    BT = B * T
    vmem_cap, mxu_width, two_core = _tpu_info()

    # --- pack G slabs along the node axis so each attention matmul is MXU-wide
    G = max(1, min(BT, mxu_width // N)) if N < mxu_width else 1
    SW = G * N
    num_super = -(-BT // G)                       # super-slabs before tiling pad

    # --- per-generation VMEM budget and super-slab batch per grid step
    vmem_limit = min(int(vmem_cap * 0.75), 96 * 1024 * 1024)
    budget = int(vmem_limit * 0.6)
    # double-buffered in/out blocks + ~4 (TB,SW,SW) f32 intermediates per slab
    per_slab = 2 * 2 * SW * F * 4 + 4 * SW * SW * 4
    fixed = 2 * 2 * SW * SW * 4                   # adj + bias (double-buffered)
    TB = max(1, min((budget - fixed) // per_slab, num_super))
    if two_core and num_super >= 2:
        TB = min(TB, -(-num_super // 2))          # guarantee >= 2 grid steps
    grid_len = -(-num_super // TB)
    if two_core and grid_len > 1 and grid_len % 2:
        grid_len += 1                             # even split across the 2 TCs
    S_pad = grid_len * TB
    BT_pad = S_pad * G

    # --- wrapper-side padding / packing reshape (zero slabs sliced off later)
    x_flat = x.reshape(BT, N, F)
    if BT_pad > BT:
        x_flat = jnp.pad(x_flat, ((0, BT_pad - BT), (0, 0), (0, 0)))
    x_super = x_flat.reshape(S_pad, SW, F)

    # --- resident (SW, SW) constants, built ONCE outside the kernel
    eye_g = jnp.eye(G, dtype=norm_adj.dtype)
    adj_tiled = jnp.kron(eye_g, norm_adj)                       # block-diag adjacency
    blk = jnp.kron(eye_g, jnp.ones((N, N), norm_adj.dtype))     # 1 on-diag blocks
    bias = (1.0 - blk) * jnp.asarray(_NEG_INF, norm_adj.dtype)  # 0 / -1e30

    # f32 MXU feeds by default for parity with the PyTorch forward; flip to
    # bf16 (accumulate f32) on bf16-native MXUs if a little drift is acceptable.
    compute_dtype = jnp.bfloat16 if use_bf16_matmul else x.dtype

    cost = pl.CostEstimate(
        flops=2 * 2 * S_pad * SW * SW * F,        # two wide matmuls per super-slab
        transcendentals=S_pad * SW * SW,          # exp (softmax)
        bytes_accessed=2 * S_pad * SW * F * 4 + 2 * SW * SW * 4,
    )

    out_super = pl.pallas_call(
        partial(_sa_gcn_kernel, feat=F, matmul_dtype=compute_dtype),
        out_shape=jax.ShapeDtypeStruct((S_pad, SW, F), x.dtype),
        grid_spec=pltpu.PrefetchScalarGridSpec(
            num_scalar_prefetch=0,
            grid=(grid_len,),
            in_specs=[
                pl.BlockSpec((SW, SW), lambda i: (0, 0)),        # tiled adjacency
                pl.BlockSpec((SW, SW), lambda i: (0, 0)),        # block-diag bias
                pl.BlockSpec((TB, SW, F), lambda i: (i, 0, 0)),  # packed slabs
            ],
            out_specs=pl.BlockSpec((TB, SW, F), lambda i: (i, 0, 0)),
        ),
        compiler_params=pltpu.CompilerParams(
            dimension_semantics=("parallel",),
            vmem_limit_bytes=vmem_limit,
        ),
        cost_estimate=cost,
    )(adj_tiled, bias, x_super)

    # TODO(synk): dropout (train mode) omitted -- identity, as in eval().
    out_flat = out_super.reshape(BT_pad, N, F)[:BT]
    return out_flat.reshape(B, T, N, F)


def _reference(x, norm_adj):
    """Pure-JAX reference of the PyTorch forward (eval mode)."""
    B, T, N, F = x.shape
    xf = x.reshape(-1, N, F)
    score = jnp.einsum("bnf,bmf->bnm", xf, xf,
                       precision=jax.lax.Precision.HIGHEST) / math.sqrt(F)
    attn = jax.nn.softmax(score, axis=-1) / math.sqrt(F)
    w = norm_adj[None, :, :] * attn
    out = jax.nn.relu(jnp.einsum("bnm,bmf->bnf", w, xf,
                                 precision=jax.lax.Precision.HIGHEST))
    return out.reshape(B, T, N, F)


if __name__ == "__main__":
    key = jax.random.PRNGKey(0)
    k_x, k_a = jax.random.split(key)

    B, T, N, F = 2, 8, 16, 32
    x = jax.random.normal(k_x, (B, T, N, F), dtype=jnp.float32)

    # Deterministic "normalized adjacency": random symmetric adj, row-normalized.
    a_raw = jax.random.uniform(k_a, (N, N), dtype=jnp.float32)
    a_sym = 0.5 * (a_raw + a_raw.T) + jnp.eye(N, dtype=jnp.float32)
    norm_adj = a_sym / jnp.sum(a_sym, axis=-1, keepdims=True)

    out = spatial_attention_scaled_gcn(x, norm_adj)
    out = jax.block_until_ready(out)

    ref = _reference(x, norm_adj)
    assert out.shape == (B, T, N, F)
    assert jnp.allclose(out, ref, atol=1e-3, rtol=1e-3), "mismatch vs reference"

    print("KERNEL_OK")
</pallas_src>

<mosaic_0001>
module attributes {stable_mosaic.version = 11 : i64} {
  func.func @_sa_gcn_kernel(%arg0: i32, %arg1: memref<256x256xf32, #tpu.memory_space<vmem>>, %arg2: memref<256x256xf32, #tpu.memory_space<vmem>>, %arg3: memref<1x256x32xf32, #tpu.memory_space<vmem>>, %arg4: memref<1x256x32xf32, #tpu.memory_space<vmem>>) attributes {dimension_semantics = [#tpu.dimension_semantics<parallel>], iteration_bounds = array<i64: 1>, scalar_prefetch = 0 : i64, scratch_operands = 0 : i64, tpu.core_type = #tpu.core_type<tc>, window_params = [{pipeline_mode = #tpu.pipeline_mode<synchronous>, transform_indices = @transform_0, window_bounds = array<i64: 256, 256>}, {pipeline_mode = #tpu.pipeline_mode<synchronous>, transform_indices = @transform_1, window_bounds = array<i64: 256, 256>}, {transform_indices = @transform_2, window_bounds = array<i64: 1, 256, 32>}, {transform_indices = @transform_3, window_bounds = array<i64: 1, 256, 32>}]} {
    %c0 = arith.constant 0 : index
    %c0_0 = arith.constant 0 : index
    %c0_1 = arith.constant 0 : index
    %0 = vector.load %arg3[%c0, %c0_0, %c0_1] : memref<1x256x32xf32, #tpu.memory_space<vmem>>, vector<1x256x32xf32>
    %c0_2 = arith.constant 0 : index
    %c0_3 = arith.constant 0 : index
    %1 = vector.load %arg1[%c0_2, %c0_3] : memref<256x256xf32, #tpu.memory_space<vmem>>, vector<256x256xf32>
    %c0_4 = arith.constant 0 : index
    %c0_5 = arith.constant 0 : index
    %2 = vector.load %arg2[%c0_4, %c0_5] : memref<256x256xf32, #tpu.memory_space<vmem>>, vector<256x256xf32>
    "tpu.trace_start"() <{level = 10 : i32, message = "bnf,bmf->bnm"}> : () -> ()
    %cst = arith.constant dense<0.000000e+00> : vector<1x256x256xf32>
    %3 = tpu.matmul %0, %0, %cst {dimension_numbers = #tpu.dot_dimension_numbers<[2], [2], [1], [1], [0, 0, 0, 1, 1, 1], [0], [0]>} : vector<1x256x32xf32>, vector<1x256x32xf32>, vector<1x256x256xf32> -> vector<1x256x256xf32>
    "tpu.trace_stop"() : () -> ()
    %cst_6 = arith.constant 0.176776692 : f32
    %4 = vector.broadcast %cst_6 : f32 to vector<1x256x256xf32>
    %5 = arith.mulf %3, %4 : vector<1x256x256xf32>
    %6 = vector.shape_cast %2 : vector<256x256xf32> to vector<1x256x256xf32>
    %7 = arith.addf %5, %6 : vector<1x256x256xf32>
    %cst_7 = arith.constant dense<0xFF800000> : vector<1x256xf32>
    %8 = vector.multi_reduction <maximumf>, %7, %cst_7 [2] : vector<1x256x256xf32> to vector<1x256xf32>
    %9 = vector.shape_cast %8 : vector<1x256xf32> to vector<1x256x1xf32>
    %10 = vector.broadcast %9 : vector<1x256x1xf32> to vector<1x256x256xf32>
    %11 = arith.subf %7, %10 : vector<1x256x256xf32>
    %12 = math.exp %11 : vector<1x256x256xf32>
    %cst_8 = arith.constant dense<0.000000e+00> : vector<1x256xf32>
    %13 = vector.multi_reduction <add>, %12, %cst_8 [2] : vector<1x256x256xf32> to vector<1x256xf32>
    %14 = vector.shape_cast %13 : vector<1x256xf32> to vector<1x256x1xf32>
    %15 = tpu.reciprocal %14 : vector<1x256x1xf32> -> vector<1x256x1xf32>
    %cst_9 = arith.constant 0.176776692 : f32
    %16 = vector.broadcast %cst_9 : f32 to vector<1x256x1xf32>
    %17 = arith.mulf %15, %16 : vector<1x256x1xf32>
    %18 = vector.broadcast %17 : vector<1x256x1xf32> to vector<1x256x256xf32>
    %19 = arith.mulf %12, %18 : vector<1x256x256xf32>
    %20 = vector.shape_cast %1 : vector<256x256xf32> to vector<1x256x256xf32>
    %21 = arith.mulf %20, %19 : vector<1x256x256xf32>
    "tpu.trace_start"() <{level = 10 : i32, message = "bnm,bmf->bnf"}> : () -> ()
    %cst_10 = arith.constant dense<0.000000e+00> : vector<1x256x32xf32>
    %22 = tpu.matmul %21, %0, %cst_10 {dimension_numbers = #tpu.dot_dimension_numbers<[2], [1], [1], [2], [0, 0, 0, 1, 1, 2], [0], [0]>} : vector<1x256x256xf32>, vector<1x256x32xf32>, vector<1x256x32xf32> -> vector<1x256x32xf32>
    "tpu.trace_stop"() : () -> ()
    %cst_11 = arith.constant 0.000000e+00 : f32
    %23 = vector.broadcast %cst_11 : f32 to vector<1x256x32xf32>
    %24 = arith.maximumf %22, %23 : vector<1x256x32xf32>
    %c0_12 = arith.constant 0 : index
    %c0_13 = arith.constant 0 : index
    %c0_14 = arith.constant 0 : index
    %25 = vector.load %arg4[%c0_12, %c0_13, %c0_14] : memref<1x256x32xf32, #tpu.memory_space<vmem>>, vector<1x256x32xf32>
    tpu.vector_store %arg4[%c0_12, %c0_13, %c0_14], %24 {strides = array<i32>} : memref<1x256x32xf32, #tpu.memory_space<vmem>>, vector<1x256x32xf32>,
    return
  }
  func.func @transform_0(%arg0: i32) -> (i32, i32) {
    %c0_i32 = arith.constant 0 : i32
    %c0_i32_0 = arith.constant 0 : i32
    %c0_i32_1 = arith.constant 0 : i32
    return %c0_i32, %c0_i32_0 : i32, i32
  }
  func.func @transform_1(%arg0: i32) -> (i32, i32) {
    %c0_i32 = arith.constant 0 : i32
    %c0_i32_0 = arith.constant 0 : i32
    %c0_i32_1 = arith.constant 0 : i32
    return %c0_i32, %c0_i32_0 : i32, i32
  }
  func.func @transform_2(%arg0: i32) -> (i32, i32, i32) {
    %c0_i32 = arith.constant 0 : i32
    %c0_i32_0 = arith.constant 0 : i32
    %c0_i32_1 = arith.constant 0 : i32
    return %arg0, %c0_i32, %c0_i32_0 : i32, i32, i32
  }
  func.func @transform_3(%arg0: i32) -> (i32, i32, i32) {
    %c0_i32 = arith.constant 0 : i32
    %c0_i32_0 = arith.constant 0 : i32
    %c0_i32_1 = arith.constant 0 : i32
    return %arg0, %c0_i32, %c0_i32_0 : i32, i32, i32
  }
}

</mosaic_0001>

<bundles_post_ra>
// kernel: tpu_custom_call.1
= control target key start
LH: loop header
LB: loop body
LE: loop exit
PB: predicated region body
PF: predicated region fallthrough
CT: control target
= control target key end

     0   :  { %8 = vsyncpa [#allocation3], 0  ;;  %s3113_s0 = inlined_call_operand.hbm [shape: f32[256,256], index: 0, kind: input, shape index: {}]   ;;  %s3114_s1 = inlined_call_operand.hbm [shape: f32[256,256], index: 1, kind: input, shape index: {}]   ;;  %s3115_s2 = inlined_call_operand.vmem [shape: f32[1,256,32], index: 2, kind: input, shape index: {}]   ;;  %s3116_s3 = inlined_call_operand.vmem [shape: f32[1,256,32], index: 3, kind: output, shape index: {}]  }
   0x1   :  { %9 = vsyncpa [#allocation5], 0  ;;  %s2056_s12 = smov [#allocation2]   ;;  %s2008_s16 = scalar_lea.hbm %s3113_s0, 8192 }
   0x2   :  { %s15_s13 = sshll.u32 %s2056_s12, 4  ;;  %p2009_p0 = scmp.ne.s32.totalorder %s3113_s0, %s2008_s16  ;;  %s16_s13 = int_to_ptr.vmem [resolvable:$true] %s15_s13 }
   0x3   :  { %p2012_p1 = scmp.lt.u32.totalorder %s2008_s16, %s3113_s0 }
   0x5   :  { %p2014_p2 = pnand %p2012_p1, %p2009_p0 }
   0x7   :  { %2017 = shalt.err (!%p2014_p2)
}
   0x8   :  { %s2018_s21 = scalar_lea.vmem %s16_s13, 8192  ;;  %p2023_p4 = scmp.lt.s32.totalorder %s16_s13, %s16_s13 }
   0x9   :  { %p2019_p3 = scmp.ne.s32.totalorder %s16_s13, %s2018_s21  ;;  %p2024_p5 = scmp.lt.s32.totalorder %s2018_s21, %s2018_s21 }
   0xb   :  { %p2025_p6 = por %p2024_p5, %p2023_p4 }
   0xd   :  { %p2026_p7 = pnand %p2025_p6, %p2019_p3 }
   0xf   :  { %2029 = shalt.err (!%p2026_p7)
}
  0x10   :  { %s2057_s22 = smov 256   ;;  %s2058_s23 = smov 16  }
  0x11   :  { %21 = dma.hbm_to_vmem [thread:$0]  %s3113_s0, 8192, %s16_s13, [#allocation3], %s2057_s22, %s2057_s22, %s2058_s23  }
  0x12   :  { %s2059_s26 = smov [#allocation4]   ;;  %s2030_s30 = scalar_lea.hbm %s3114_s1, 8192 }
  0x13   :  { %s27_s27 = sshll.u32 %s2059_s26, 4  ;;  %p2031_p8 = scmp.ne.s32.totalorder %s3114_s1, %s2030_s30  ;;  %s28_s27 = int_to_ptr.vmem [resolvable:$true] %s27_s27 }
  0x14   :  { %p2034_p9 = scmp.lt.u32.totalorder %s2030_s30, %s3114_s1 }
  0x16   :  { %p2036_p10 = pnand %p2034_p9, %p2031_p8 }
  0x18   :  { %2039 = shalt.err (!%p2036_p10)
}
  0x19   :  { %s2040_s8 = scalar_lea.vmem %s28_s27, 8192  ;;  %p2045_p12 = scmp.lt.s32.totalorder %s28_s27, %s28_s27 }
  0x1a   :  { %p2041_p11 = scmp.ne.s32.totalorder %s28_s27, %s2040_s8  ;;  %p2046_p13 = scmp.lt.s32.totalorder %s2040_s8, %s2040_s8 }
  0x1c   :  { %p2047_p0 = por %p2046_p13, %p2045_p12 }
  0x1e   :  { %p2048_p1 = pnand %p2047_p0, %p2041_p11 }
  0x20   :  { %2051 = shalt.err (!%p2048_p1)
}
  0x21   :  { %33 = dma.hbm_to_vmem [thread:$0]  %s3114_s1, 8192, %s28_s27, [#allocation5], %s2057_s22, %s2057_s22, %s2058_s23  }
  0x22   :  { %2052 = dma.done.wait [#allocation3], 8192  }
  0x23   :  { %2053 = vsyncadd [#allocation3], 4294959104 }
  0x24   :  { %2054 = dma.done.wait [#allocation5], 8192  }
  0x25   :  { %2055 = vsyncadd [#allocation5], 4294959104  ;;  %vm202_vm0 = vcmask 261120   ;;  %v2114_v1 = vld [vmem:[%s3115_s2 + $0x80] sm:$0xff]  ;;  %v2119_v2 = vld [vmem:[%s3115_s2 + $0x88] sm:$0xff] }
  0x26   :  { %vm2107_vm1 = vmpackc.low %vm202_vm0, %vm202_vm0  ;;  %v2124_v3 = vld [vmem:[%s3115_s2] sm:$0xff]  ;;  %v2128_v4 = vpack.c.bf16 %v2119_v2, %v2114_v1  ;;  %v2133_v5 = vld [vmem:[%s3115_s2 + $0x8] sm:$0xff] }
  0x27   :  { %v2138_v6 = vld [vmem:[%s3115_s2 + $0x90] sm:$0xff]  ;;  %v2143_v7 = vld [vmem:[%s3115_s2 + $0x98] sm:$0xff]  ;;  %1651 = vmatprep.mubr.msk.f32.mxu0 %vm202_vm0, %v2124_v3  ;;  %v2149_v8 = vpack.c.bf16 %v2133_v5, %v2124_v3  ;;  %v2173_v12 = vld [vmem:[%s3115_s2 + $0xa0] sm:$0xff] }
  0x28   :  { %v2153_v9 = vpack.c.bf16 %v2143_v7, %v2138_v6  ;;  %1717 = vmatprep.subr.msk.bf16.mxu0 %vm2107_vm1, %v2128_v4  ;;  %v44_v10 = vld [vmem:[%s3115_s2 + $0x10] sm:$0xff]  ;;  %v45_v11 = vld [vmem:[%s3115_s2 + $0x18] sm:$0xff]  ;;  %v2178_v13 = vld [vmem:[%s3115_s2 + $0xa8] sm:$0xff] }
  0x29   :  { %1720 = vmatpush3.bf16.xpose.msk.msra.mxu0 %vm2107_vm1, %v2149_v8  ;;  %v2180_v14 = vpack.c.bf16 %v45_v11, %v44_v10  ;;  %v2184_v15 = vpack.c.bf16 %v2178_v13, %v2173_v12  ;;  %v46_v16 = vld [vmem:[%s3115_s2 + $0x20] sm:$0xff]  ;;  %v47_v17 = vld [vmem:[%s3115_s2 + $0x28] sm:$0xff]  ;;  %v2201_v18 = vld [vmem:[%s3115_s2 + $0xb0] sm:$0xff] }
  0x2a   :  { %1723 = vmatprep.subr.msk.bf16.mxu0 %vm2107_vm1, %v2153_v9  ;;  %v2206_v19 = vld [vmem:[%s3115_s2 + $0xb8] sm:$0xff]  ;;  %v2208_v20 = vpack.c.bf16 %v47_v17, %v46_v16  ;;  %v48_v22 = vld [vmem:[%s3115_s2 + $0x30] sm:$0xff]  ;;  %v2229_v24 = vld [vmem:[%s3115_s2 + $0xc0] sm:$0xff] }
  0x2b   :  { %v2212_v21 = vpack.c.bf16 %v2206_v19, %v2201_v18  ;;  %v49_v23 = vld [vmem:[%s3115_s2 + $0x38] sm:$0xff]  ;;  %v2234_v25 = vld [vmem:[%s3115_s2 + $0xc8] sm:$0xff]  ;;  %v50_v28 = vld [vmem:[%s3115_s2 + $0x40] sm:$0xff] }
  0x2c   :  { %v2236_v26 = vpack.c.bf16 %v49_v23, %v48_v22  ;;  %v2240_v27 = vpack.c.bf16 %v2234_v25, %v2229_v24  ;;  %v51_v29 = vld [vmem:[%s3115_s2 + $0x48] sm:$0xff]  ;;  %v2257_v30 = vld [vmem:[%s3115_s2 + $0xd0] sm:$0xff]  ;;  %v2262_v31 = vld [vmem:[%s3115_s2 + $0xd8] sm:$0xff] }
  0x2d   :  { %v2264_v32 = vpack.c.bf16 %v51_v29, %v50_v28  ;;  %v2268_v33 = vpack.c.bf16 %v2262_v31, %v2257_v30  ;;  %v52_v34 = vld [vmem:[%s3115_s2 + $0x50] sm:$0xff]  ;;  %v53_v35 = vld [vmem:[%s3115_s2 + $0x58] sm:$0xff]  ;;  %v2285_v36 = vld [vmem:[%s3115_s2 + $0xe0] sm:$0xff] }
  0x2e   :  { %v2290_v37 = vld [vmem:[%s3115_s2 + $0xe8] sm:$0xff]  ;;  %v2292_v38 = vpack.c.bf16 %v53_v35, %v52_v34  ;;  %v54_v40 = vld [vmem:[%s3115_s2 + $0x60] sm:$0xff]  ;;  %v2313_v42 = vld [vmem:[%s3115_s2 + $0xf0] sm:$0xff] }
  0x2f   :  { %v2296_v39 = vpack.c.bf16 %v2290_v37, %v2285_v36  ;;  %v55_v41 = vld [vmem:[%s3115_s2 + $0x68] sm:$0xff]  ;;  %v2318_v43 = vld [vmem:[%s3115_s2 + $0xf8] sm:$0xff]  ;;  %v56_v46 = vld [vmem:[%s3115_s2 + $0x70] sm:$0xff] }
  0x30   :  { %v2320_v44 = vpack.c.bf16 %v55_v41, %v54_v40  ;;  %v2324_v45 = vpack.c.bf16 %v2318_v43, %v2313_v42  ;;  %v57_v47 = vld [vmem:[%s3115_s2 + $0x78] sm:$0xff]  ;;  %v138_v50 = vld [vmem:[#allocation4] sm:$0xff]  ;;  %v139_v53 = vld [vmem:[#allocation4 + $0x8] sm:$0xff] }
  0x31   :  { %1726 = vmatpush3.bf16.xpose.msk.msra.mxu0 %vm2107_vm1, %v2180_v14  ;;  %v2338_v48 = vpack.c.bf16 %v57_v47, %v56_v46  ;;  %v140_v56 = vld [vmem:[#allocation4 + $0x10] sm:$0xff]  ;;  %v141_v60 = vld [vmem:[#allocation4 + $0x18] sm:$0xff] }
  0x32   :  { %1729 = vmatprep.subr.msk.bf16.mxu0 %vm2107_vm1, %v2184_v15 }
  0x39   :  { %1732 = vmatpush3.bf16.xpose.msk.msra.mxu0 %vm2107_vm1, %v2208_v20 }
  0x3a   :  { %1735 = vmatprep.subr.msk.bf16.mxu0 %vm2107_vm1, %v2212_v21 }
  0x41   :  { %1738 = vmatpush3.bf16.xpose.msk.msra.mxu0 %vm2107_vm1, %v2236_v26 }
  0x42   :  { %1741 = vmatprep.subr.msk.bf16.mxu0 %vm2107_vm1, %v2240_v27 }
  0x49   :  { %1744 = vmatpush3.bf16.xpose.msk.msra.mxu0 %vm2107_vm1, %v2264_v32 }
  0x4a   :  { %1747 = vmatprep.subr.msk.bf16.mxu0 %vm2107_vm1, %v2268_v33 }
  0x51   :  { %1750 = vmatpush3.bf16.xpose.msk.msra.mxu0 %vm2107_vm1, %v2292_v38 }
  0x52   :  { %1753 = vmatprep.subr.msk.bf16.mxu0 %vm2107_vm1, %v2296_v39 }
  0x59   :  { %1756 = vmatpush3.bf16.xpose.msk.msra.mxu0 %vm2107_vm1, %v2320_v44 }
  0x5a   :  { %1759 = vmatprep.subr.msk.bf16.mxu0 %vm2107_vm1, %v2324_v45 }
  0x61   :  { %1762 = vmatpush3.bf16.xpose.msk.msra.mxu0 %vm2107_vm1, %v2338_v48 }
  0x68   :  { %1652 = vmatmul.mubr.msk.f32.vlgmr.msra.gmra.mrb[0].mxu0 %vm202_vm0, %v2124_v3  ;;  %v142_v3 = vld [vmem:[#allocation4 + $0x20] sm:$0xff] }
  0x69   :  { %1653 = vmatprep.mubr.msk.f32.mxu0 %vm202_vm0, %v2133_v5 }
  0x6c   :  { %1654 = vmatmul.mubr.msk.f32.gmra.mrb[2].mxu0 %vm202_vm0, %v2133_v5 }
  0x6d   :  { %1655 = vmatprep.mubr.msk.f32.mxu0 %vm202_vm0, %v44_v10 }
  0x70   :  { %1656 = vmatmul.mubr.msk.f32.gmra.mrb[4].mxu0 %vm202_vm0, %v44_v10 }
  0x71   :  { %1657 = vmatprep.mubr.msk.f32.mxu0 %vm202_vm0, %v45_v11 }
  0x74   :  { %1658 = vmatmul.mubr.msk.f32.gmra.mrb[6].mxu0 %vm202_vm0, %v45_v11 }
  0x75   :  { %1659 = vmatprep.mubr.msk.f32.mxu0 %vm202_vm0, %v46_v16 }
  0x78   :  { %1660 = vmatmul.mubr.msk.f32.gmra.mrb[8].mxu0 %vm202_vm0, %v46_v16 }
  0x79   :  { %1661 = vmatprep.mubr.msk.f32.mxu0 %vm202_vm0, %v47_v17 }
  0x7c   :  { %1662 = vmatmul.mubr.msk.f32.gmra.mrb[10].mxu0 %vm202_vm0, %v47_v17 }
  0x7d   :  { %1663 = vmatprep.mubr.msk.f32.mxu0 %vm202_vm0, %v48_v22 }
  0x80   :  { %1664 = vmatmul.mubr.msk.f32.gmra.mrb[12].mxu0 %vm202_vm0, %v48_v22 }
  0x81   :  { %1665 = vmatprep.mubr.msk.f32.mxu0 %vm202_vm0, %v49_v23 }
  0x84   :  { %1666 = vmatmul.mubr.msk.f32.gmra.mrb[14].mxu0 %vm202_vm0, %v49_v23 }
  0x85   :  { %1667 = vmatprep.mubr.msk.f32.mxu0 %vm202_vm0, %v50_v28 }
  0x88   :  { %1668 = vmatmul.mubr.msk.f32.gmra.mrb[16].mxu0 %vm202_vm0, %v50_v28 }
  0x89   :  { %1669 = vmatprep.mubr.msk.f32.mxu0 %vm202_vm0, %v51_v29 }
  0x8c   :  { %1670 = vmatmul.mubr.msk.f32.gmra.mrb[18].mxu0 %vm202_vm0, %v51_v29  ;;  %v146_v29 = vld [vmem:[#allocation4 + $0x40] sm:$0xff] }
  0x8d   :  { %1671 = vmatprep.mubr.msk.f32.mxu0 %vm202_vm0, %v52_v34 }
  0x90   :  { %1672 = vmatmul.mubr.msk.f32.gmra.mrb[20].mxu0 %vm202_vm0, %v52_v34  ;;  %v147_v34 = vld [vmem:[#allocation4 + $0x48] sm:$0xff] }
  0x91   :  { %1673 = vmatprep.mubr.msk.f32.mxu0 %vm202_vm0, %v53_v35 }
  0x94   :  { %1674 = vmatmul.mubr.msk.f32.gmra.mrb[22].mxu0 %vm202_vm0, %v53_v35 }
  0x95   :  { %1675 = vmatprep.mubr.msk.f32.mxu0 %vm202_vm0, %v54_v40 }
  0x98   :  { %1676 = vmatmul.mubr.msk.f32.gmra.mrb[24].mxu0 %vm202_vm0, %v54_v40 }
  0x99   :  { %1677 = vmatprep.mubr.msk.f32.mxu0 %vm202_vm0, %v55_v41 }
  0x9c   :  { %1678 = vmatmul.mubr.msk.f32.gmra.mrb[26].mxu0 %vm202_vm0, %v55_v41 }
  0x9d   :  { %1679 = vmatprep.mubr.msk.f32.mxu0 %vm202_vm0, %v56_v46 }
  0xa0   :  { %1680 = vmatmul.mubr.msk.f32.gmra.mrb[28].mxu0 %vm202_vm0, %v56_v46 }
  0xa1   :  { %1681 = vmatprep.mubr.msk.f32.mxu0 %vm202_vm0, %v57_v47 }
  0xa4   :  { %1682 = vmatmul.mubr.msk.f32.gmra.mrb[30].mxu0 %vm202_vm0, %v57_v47  ;;  %v149_v47 = vld [vmem:[#allocation4 + $0x58] sm:$0xff] }
  0xa5   :  { %1683 = vmatprep.mubr.msk.f32.mxu0 %vm202_vm0, %v2114_v1 }
  0xa8   :  { %1684 = vmatmul.mubr.msk.f32.gmra.mrb[32].mxu0 %vm202_vm0, %v2114_v1 }
  0xa9   :  { %1685 = vmatprep.mubr.msk.f32.mxu0 %vm202_vm0, %v2119_v2 }
  0xac   :  { %1686 = vmatmul.mubr.msk.f32.gmra.mrb[34].mxu0 %vm202_vm0, %v2119_v2 }
  0xad   :  { %1687 = vmatprep.mubr.msk.f32.mxu0 %vm202_vm0, %v2138_v6 }
  0xb0   :  { %1688 = vmatmul.mubr.msk.f32.gmra.mrb[36].mxu0 %vm202_vm0, %v2138_v6 }
  0xb1   :  { %1689 = vmatprep.mubr.msk.f32.mxu0 %vm202_vm0, %v2143_v7 }
  0xb4   :  { %1690 = vmatmul.mubr.msk.f32.gmra.mrb[38].mxu0 %vm202_vm0, %v2143_v7  ;;  %v143_v7 = vld [vmem:[#allocation4 + $0x28] sm:$0xff] }
  0xb5   :  { %1691 = vmatprep.mubr.msk.f32.mxu0 %vm202_vm0, %v2173_v12 }
  0xb8   :  { %1692 = vmatmul.mubr.msk.f32.gmra.mrb[40].mxu0 %vm202_vm0, %v2173_v12 }
  0xb9   :  { %1693 = vmatprep.mubr.msk.f32.mxu0 %vm202_vm0, %v2178_v13 }
  0xbc   :  { %1694 = vmatmul.mubr.msk.f32.gmra.mrb[42].mxu0 %vm202_vm0, %v2178_v13  ;;  %v144_v13 = vld [vmem:[#allocation4 + $0x30] sm:$0xff] }
  0xbd   :  { %1695 = vmatprep.mubr.msk.f32.mxu0 %vm202_vm0, %v2201_v18 }
  0xc0   :  { %1696 = vmatmul.mubr.msk.f32.gmra.mrb[44].mxu0 %vm202_vm0, %v2201_v18 }
  0xc1   :  { %1697 = vmatprep.mubr.msk.f32.mxu0 %vm202_vm0, %v2206_v19 }
  0xc4   :  { %1698 = vmatmul.mubr.msk.f32.gmra.mrb[46].mxu0 %vm202_vm0, %v2206_v19  ;;  %v145_v19 = vld [vmem:[#allocation4 + $0x38] sm:$0xff] }
  0xc5   :  { %1699 = vmatprep.mubr.msk.f32.mxu0 %vm202_vm0, %v2229_v24 }
  0xc8   :  { %1700 = vmatmul.mubr.msk.f32.gmra.mrb[48].mxu0 %vm202_vm0, %v2229_v24 }
  0xc9   :  { %1701 = vmatprep.mubr.msk.f32.mxu0 %vm202_vm0, %v2234_v25 }
  0xcc   :  { %1702 = vmatmul.mubr.msk.f32.gmra.mrb[50].mxu0 %vm202_vm0, %v2234_v25 }
  0xcd   :  { %1703 = vmatprep.mubr.msk.f32.mxu0 %vm202_vm0, %v2257_v30 }
  0xd0   :  { %1704 = vmatmul.mubr.msk.f32.gmra.mrb[52].mxu0 %vm202_vm0, %v2257_v30 }
  0xd1   :  { %1705 = vmatprep.mubr.msk.f32.mxu0 %vm202_vm0, %v2262_v31 }
  0xd4   :  { %1706 = vmatmul.mubr.msk.f32.gmra.mrb[54].mxu0 %vm202_vm0, %v2262_v31 }
  0xd5   :  { %1707 = vmatprep.mubr.msk.f32.mxu0 %vm202_vm0, %v2285_v36 }
  0xd8   :  { %1708 = vmatmul.mubr.msk.f32.gmra.mrb[56].mxu0 %vm202_vm0, %v2285_v36 }
  0xd9   :  { %1709 = vmatprep.mubr.msk.f32.mxu0 %vm202_vm0, %v2290_v37 }
  0xdc   :  { %1710 = vmatmul.mubr.msk.f32.gmra.mrb[58].mxu0 %vm202_vm0, %v2290_v37 }
  0xdd   :  { %1711 = vmatprep.mubr.msk.f32.mxu0 %vm202_vm0, %v2313_v42 }
  0xe0   :  { %1712 = vmatmul.mubr.msk.f32.gmra.mrb[60].mxu0 %vm202_vm0, %v2313_v42  ;;  %v148_v42 = vld [vmem:[#allocation4 + $0x50] sm:$0xff] }
  0xe1   :  { %1713 = vmatprep.mubr.msk.f32.mxu0 %vm202_vm0, %v2318_v43 }
  0xe4   :  { %1714 = vmatmul.mubr.msk.f32.gmra.mrb[62].mxu0 %vm202_vm0, %v2318_v43 }
 0x13b   :  { %v365_v49 = vpop.f32.mrb[0].mxu0 }
 0x13c   :  { %v556_v51 = vmul.f32 0.17677669, %v365_v49  ;;  %v367_v52 = vpop.f32.mrb[1].mxu0 }
 0x13d   :  { %v557_v54 = vmul.f32 0.17677669, %v367_v52 }
 0x13e   :  { %v2441_v55 = vadd.f32 %v556_v51, %v138_v50 }
 0x13f   :  { %v371_v57 = vpop.f32.mrb[2].mxu0  ;;  %v2443_v58 = vadd.f32 %v557_v54, %v139_v53  ;;  %v150_v54 = vld [vmem:[#allocation4 + $0x60] sm:$0xff] }
 0x140   :  { %v558_v59 = vmul.f32 0.17677669, %v371_v57  ;;  %v373_v61 = vpop.f32.mrb[3].mxu0 }
 0x141   :  { %v559_v62 = vmul.f32 0.17677669, %v373_v61  ;;  %v684_v63 = vmax.f32 %v2441_v55, %v2443_v58 }
 0x142   :  { %v2447_v0 = vadd.f32 %v558_v59, %v140_v56  ;;  %v151_v59 = vld [vmem:[#allocation4 + $0x68] sm:$0xff] }
 0x143   :  { %v2449_v1 = vadd.f32 %v559_v62, %v141_v60  ;;  %685 = vmax.xlane.f32.xlu0 %v684_v63  ;;  %v377_v2 = vpop.f32.mrb[4].mxu0 }
 0x144   :  { %v560_v5 = vmul.f32 0.17677669, %v377_v2  ;;  %v379_v6 = vpop.f32.mrb[5].mxu0 }
 0x145   :  { %v561_v10 = vmul.f32 0.17677669, %v379_v6  ;;  %v687_v11 = vmax.f32 %v2447_v0, %v2449_v1 }
 0x146   :  { %v2453_v12 = vadd.f32 %v560_v5, %v142_v3  ;;  %v152_v3 = vld [vmem:[#allocation4 + $0x70] sm:$0xff] }
 0x147   :  { %688 = vmax.xlane.f32.xlu0 %v687_v11  ;;  %v383_v16 = vpop.f32.mrb[6].mxu0  ;;  %v2455_v17 = vadd.f32 %v561_v10, %v143_v7  ;;  %v153_v7 = vld [vmem:[#allocation4 + $0x78] sm:$0xff] }
 0x148   :  { %v562_v18 = vmul.f32 0.17677669, %v383_v16  ;;  %v385_v22 = vpop.f32.mrb[7].mxu0 }
 0x149   :  { %v563_v23 = vmul.f32 0.17677669, %v385_v22  ;;  %v690_v24 = vmax.f32 %v2453_v12, %v2455_v17 }
 0x14a   :  { %v2459_v25 = vadd.f32 %v562_v18, %v144_v13 }
 0x14b   :  { %v2461_v28 = vadd.f32 %v563_v23, %v145_v19  ;;  %691 = vmax.xlane.f32.xlu1 %v690_v24  ;;  %v389_v30 = vpop.f32.mrb[8].mxu0  ;;  %v154_v19 = vld [vmem:[#allocation4 + $0x80] sm:$0xff]  ;;  %v155_v24 = vld [vmem:[#allocation4 + $0x88] sm:$0xff] }
 0x14c   :  { %v564_v31 = vmul.f32 0.17677669, %v389_v30  ;;  %v391_v35 = vpop.f32.mrb[9].mxu0 }
 0x14d   :  { %v565_v36 = vmul.f32 0.17677669, %v391_v35  ;;  %v693_v37 = vmax.f32 %v2459_v25, %v2461_v28 }
 0x14e   :  { %v2465_v40 = vadd.f32 %v564_v31, %v146_v29 }
 0x14f   :  { %v2467_v41 = vadd.f32 %v565_v36, %v147_v34  ;;  %694 = vmax.xlane.f32.xlu1 %v693_v37  ;;  %v395_v43 = vpop.f32.mrb[10].mxu0  ;;  %v156_v36 = vld [vmem:[#allocation4 + $0x90] sm:$0xff] }
 0x150   :  { %v566_v46 = vmul.f32 0.17677669, %v395_v43  ;;  %v397_v49 = vpop.f32.mrb[11].mxu0  ;;  %v157_v43 = vld [vmem:[#allocation4 + $0x98] sm:$0xff] }
 0x151   :  { %v567_v50 = vmul.f32 0.17677669, %v397_v49  ;;  %v696_v51 = vmax.f32 %v2465_v40, %v2467_v41 }
 0x152   :  { %v2471_v52 = vadd.f32 %v566_v46, %v148_v42 }
 0x153   :  { %v2473_v53 = vadd.f32 %v567_v50, %v149_v47  ;;  %697 = vmax.xlane.f32.xlu0 %v696_v51  ;;  %v401_v56 = vpop.f32.mrb[12].mxu0 }
 0x154   :  { %v568_v57 = vmul.f32 0.17677669, %v401_v56  ;;  %v403_v60 = vpop.f32.mrb[13].mxu0 }
 0x155   :  { %v569_v61 = vmul.f32 0.17677669, %v403_v60  ;;  %v699_v62 = vmax.f32 %v2471_v52, %v2473_v53 }
 0x156   :  { %v2477_v63 = vadd.f32 %v568_v57, %v150_v54  ;;  %v158_v54 = vld [vmem:[#allocation4 + $0xa0] sm:$0xff] }
 0x157   :  { %v2479_v2 = vadd.f32 %v569_v61, %v151_v59  ;;  %700 = vmax.xlane.f32.xlu1 %v699_v62  ;;  %v407_v5 = vpop.f32.mrb[14].mxu0  ;;  %v159_v59 = vld [vmem:[#allocation4 + $0xa8] sm:$0xff] }
 0x158   :  { %v570_v6 = vmul.f32 0.17677669, %v407_v5  ;;  %v409_v10 = vpop.f32.mrb[15].mxu0 }
 0x159   :  { %v571_v11 = vmul.f32 0.17677669, %v409_v10  ;;  %v702_v13 = vmax.f32 %v2477_v63, %v2479_v2 }
 0x15a   :  { %v2483_v16 = vadd.f32 %v570_v6, %v152_v3  ;;  %v160_v6 = vld [vmem:[#allocation4 + $0xb0] sm:$0xff] }
 0x15b   :  { %v2485_v18 = vadd.f32 %v571_v11, %v153_v7  ;;  %703 = vmax.xlane.f32.xlu0 %v702_v13  ;;  %v413_v22 = vpop.f32.mrb[16].mxu0  ;;  %v161_v11 = vld [vmem:[#allocation4 + $0xb8] sm:$0xff] }
 0x15c   :  { %v572_v23 = vmul.f32 0.17677669, %v413_v22  ;;  %v415_v29 = vpop.f32.mrb[17].mxu0 }
 0x15d   :  { %v573_v30 = vmul.f32 0.17677669, %v415_v29  ;;  %v705_v31 = vmax.f32 %v2483_v16, %v2485_v18  ;;  %v162_v29 = vld [vmem:[#allocation4 + $0xc0] sm:$0xff] }
 0x15e   :  { %v2489_v34 = vadd.f32 %v572_v23, %v154_v19 }
 0x15f   :  { %v2491_v35 = vadd.f32 %v573_v30, %v155_v24  ;;  %706 = vmax.xlane.f32.xlu1 %v705_v31  ;;  %v419_v37 = vpop.f32.mrb[18].mxu0 }
 0x160   :  { %v574_v42 = vmul.f32 0.17677669, %v419_v37  ;;  %v421_v46 = vpop.f32.mrb[19].mxu0 }
 0x161   :  { %v575_v47 = vmul.f32 0.17677669, %v421_v46  ;;  %v708_v49 = vmax.f32 %v2489_v34, %v2491_v35 }
 0x162   :  { %v2495_v50 = vadd.f32 %v574_v42, %v156_v36  ;;  %v163_v36 = vld [vmem:[#allocation4 + $0xc8] sm:$0xff] }
 0x163   :  { %v2497_v51 = vadd.f32 %v575_v47, %v157_v43  ;;  %709 = vmax.xlane.f32.xlu0 %v708_v49  ;;  %v425_v56 = vpop.f32.mrb[20].mxu0  ;;  %v164_v49 = vld [vmem:[#allocation4 + $0xd0] sm:$0xff] }
 0x164   :  { %v576_v57 = vmul.f32 0.17677669, %v425_v56  ;;  %v427_v60 = vpop.f32.mrb[21].mxu0 }
 0x165   :  { %v577_v61 = vmul.f32 0.17677669, %v427_v60  ;;  %v711_v62 = vmax.f32 %v2495_v50, %v2497_v51 }
 0x166   :  { %v2501_v3 = vadd.f32 %v576_v57, %v158_v54  ;;  %v165_v57 = vld [vmem:[#allocation4 + $0xd8] sm:$0xff] }
 0x167   :  { %v2503_v5 = vadd.f32 %v577_v61, %v159_v59  ;;  %712 = vmax.xlane.f32.xlu1 %v711_v62  ;;  %v431_v7 = vpop.f32.mrb[22].mxu0 }
 0x168   :  { %v578_v10 = vmul.f32 0.17677669, %v431_v7  ;;  %v433_v13 = vpop.f32.mrb[23].mxu0  ;;  %v166_v7 = vld [vmem:[#allocation4 + $0xe0] sm:$0xff] }
 0x169   :  { %v579_v19 = vmul.f32 0.17677669, %v433_v13  ;;  %v714_v22 = vmax.f32 %v2501_v3, %v2503_v5  ;;  %v167_v13 = vld [vmem:[#allocation4 + $0xe8] sm:$0xff] }
 0x16a   :  { %v2507_v23 = vadd.f32 %v578_v10, %v160_v6 }
 0x16b   :  { %v2509_v24 = vadd.f32 %v579_v19, %v161_v11  ;;  %715 = vmax.xlane.f32.xlu0 %v714_v22  ;;  %v437_v30 = vpop.f32.mrb[24].mxu0 }
 0x16c   :  { %v580_v31 = vmul.f32 0.17677669, %v437_v30  ;;  %v439_v37 = vpop.f32.mrb[25].mxu0 }
 0x16d   :  { %v581_v42 = vmul.f32 0.17677669, %v439_v37  ;;  %v717_v43 = vmax.f32 %v2507_v23, %v2509_v24 }
 0x16e   :  { %v2513_v46 = vadd.f32 %v580_v31, %v162_v29 }
 0x16f   :  { %v2515_v47 = vadd.f32 %v581_v42, %v163_v36  ;;  %718 = vmax.xlane.f32.xlu1 %v717_v43  ;;  %v443_v54 = vpop.f32.mrb[26].mxu0  ;;  %v168_v36 = vld [vmem:[#allocation4 + $0xf0] sm:$0xff]  ;;  %v169_v43 = vld [vmem:[#allocation4 + $0xf8] sm:$0xff] }
 0x170   :  { %v582_v56 = vmul.f32 0.17677669, %v443_v54  ;;  %v445_v59 = vpop.f32.mrb[27].mxu0 }
 0x171   :  { %v583_v60 = vmul.f32 0.17677669, %v445_v59  ;;  %v720_v61 = vmax.f32 %v2513_v46, %v2515_v47 }
 0x172   :  { %v2519_v62 = vadd.f32 %v582_v56, %v164_v49 }
 0x173   :  { %v2521_v6 = vadd.f32 %v583_v60, %v165_v57  ;;  %721 = vmax.xlane.f32.xlu0 %v720_v61  ;;  %v449_v10 = vpop.f32.mrb[28].mxu0  ;;  %v170_v60 = vld [vmem:[#allocation4 + $0x100] sm:$0xff] }
 0x174   :  { %v584_v11 = vmul.f32 0.17677669, %v449_v10  ;;  %v451_v19 = vpop.f32.mrb[29].mxu0  ;;  %v171_v10 = vld [vmem:[#allocation4 + $0x108] sm:$0xff] }
 0x175   :  { %v585_v22 = vmul.f32 0.17677669, %v451_v19  ;;  %v723_v29 = vmax.f32 %v2519_v62, %v2521_v6 }
 0x176   :  { %v2525_v30 = vadd.f32 %v584_v11, %v166_v7 }
 0x177   :  { %v2527_v31 = vadd.f32 %v585_v22, %v167_v13  ;;  %724 = vmax.xlane.f32.xlu1 %v723_v29  ;;  %v455_v37 = vpop.f32.mrb[30].mxu0 }
 0x178   :  { %v586_v42 = vmul.f32 0.17677669, %v455_v37  ;;  %v457_v49 = vpop.f32.mrb[31].mxu0  ;;  %v172_v37 = vld [vmem:[#allocation4 + $0x110] sm:$0xff] }
 0x179   :  { %v587_v54 = vmul.f32 0.17677669, %v457_v49  ;;  %v726_v56 = vmax.f32 %v2525_v30, %v2527_v31 }
 0x17a   :  { %v2531_v57 = vadd.f32 %v586_v42, %v168_v36 }
 0x17b   :  { %v2533_v59 = vadd.f32 %v587_v54, %v169_v43  ;;  %727 = vmax.xlane.f32.xlu0 %v726_v56  ;;  %v461_v61 = vpop.f32.mrb[32].mxu0  ;;  %v173_v43 = vld [vmem:[#allocation4 + $0x118] sm:$0xff] }
 0x17c   :  { %3165 = vst [vmem:[#allocation8_spill] sm:$0xff] %v2531_v57  ;;  %v588_v7 = vmul.f32 0.17677669, %v461_v61  ;;  %v463_v11 = vpop.f32.mrb[33].mxu0 }
 0x17d   :  { %3166 = vst [vmem:[#allocation9_spill] sm:$0xff] %v2533_v59  ;;  %v589_v13 = vmul.f32 0.17677669, %v463_v11  ;;  %v729_v19 = vmax.f32 %v2531_v57, %v2533_v59  ;;  %v174_v59 = vld [vmem:[#allocation4 + $0x120] sm:$0xff] }
 0x17e   :  { %v2537_v22 = vadd.f32 %v588_v7, %v170_v60 }
 0x17f   :  { %v2539_v29 = vadd.f32 %v589_v13, %v171_v10  ;;  %730 = vmax.xlane.f32.xlu1 %v729_v19  ;;  %v467_v36 = vpop.f32.mrb[34].mxu0  ;;  %v175_v10 = vld [vmem:[#allocation4 + $0x128] sm:$0xff] }
 0x180   :  { %3167 = vst [vmem:[#allocation10_spill] sm:$0xff] %v2537_v22  ;;  %v590_v42 = vmul.f32 0.17677669, %v467_v36  ;;  %v469_v49 = vpop.f32.mrb[35].mxu0 }
 0x181   :  { %3168 = vst [vmem:[#allocation11_spill] sm:$0xff] %v2539_v29  ;;  %v591_v54 = vmul.f32 0.17677669, %v469_v49  ;;  %v732_v56 = vmax.f32 %v2537_v22, %v2539_v29  ;;  %v176_v29 = vld [vmem:[#allocation4 + $0x130] sm:$0xff] }
 0x182   :  { %v2543_v61 = vadd.f32 %v590_v42, %v172_v37 }
 0x183   :  { %v2545_v11 = vadd.f32 %v591_v54, %v173_v43  ;;  %733 = vmax.xlane.f32.xlu0 %v732_v56  ;;  %v473_v60 = vpop.f32.mrb[36].mxu0  ;;  %v177_v43 = vld [vmem:[#allocation4 + $0x138] sm:$0xff] }
 0x184   :  { %3169 = vst [vmem:[#allocation12_spill] sm:$0xff] %v2543_v61  ;;  %v592_v7 = vmul.f32 0.17677669, %v473_v60  ;;  %v475_v13 = vpop.f32.mrb[37].mxu0 }
 0x185   :  { %3170 = vst [vmem:[#allocation13_spill] sm:$0xff] %v2545_v11  ;;  %v593_v19 = vmul.f32 0.17677669, %v475_v13  ;;  %v735_v36 = vmax.f32 %v2543_v61, %v2545_v11  ;;  %v178_v11 = vld [vmem:[#allocation4 + $0x140] sm:$0xff] }
 0x186   :  { %v2549_v57 = vadd.f32 %v592_v7, %v174_v59 }
 0x187   :  { %v2551_v49 = vadd.f32 %v593_v19, %v175_v10  ;;  %736 = vmax.xlane.f32.xlu1 %v735_v36  ;;  %v479_v37 = vpop.f32.mrb[38].mxu0  ;;  %v179_v10 = vld [vmem:[#allocation4 + $0x148] sm:$0xff] }
 0x188   :  { %3171 = vst [vmem:[#allocation14_spill] sm:$0xff] %v2549_v57  ;;  %v594_v42 = vmul.f32 0.17677669, %v479_v37  ;;  %v481_v54 = vpop.f32.mrb[39].mxu0 }
 0x189   :  { %3172 = vst [vmem:[#allocation15_spill] sm:$0xff] %v2551_v49  ;;  %v595_v56 = vmul.f32 0.17677669, %v481_v54  ;;  %v738_v60 = vmax.f32 %v2549_v57, %v2551_v49  ;;  %v180_v49 = vld [vmem:[#allocation4 + $0x150] sm:$0xff] }
 0x18a   :  { %v2555_v22 = vadd.f32 %v594_v42, %v176_v29 }
 0x18b   :  { %v2557_v13 = vadd.f32 %v595_v56, %v177_v43  ;;  %739 = vmax.xlane.f32.xlu0 %v738_v60  ;;  %v485_v59 = vpop.f32.mrb[40].mxu0  ;;  %v181_v43 = vld [vmem:[#allocation4 + $0x158] sm:$0xff] }
 0x18c   :  { %3173 = vst [vmem:[#allocation16_spill] sm:$0xff] %v2555_v22  ;;  %v596_v7 = vmul.f32 0.17677669, %v485_v59  ;;  %v487_v19 = vpop.f32.mrb[41].mxu0 }
 0x18d   :  { %3174 = vst [vmem:[#allocation17_spill] sm:$0xff] %v2557_v13  ;;  %v597_v36 = vmul.f32 0.17677669, %v487_v19  ;;  %v741_v37 = vmax.f32 %v2555_v22, %v2557_v13  ;;  %v182_v13 = vld [vmem:[#allocation4 + $0x160] sm:$0xff] }
 0x18e   :  { %v2561_v61 = vadd.f32 %v596_v7, %v178_v11 }
 0x18f   :  { %v2563_v54 = vadd.f32 %v597_v36, %v179_v10  ;;  %742 = vmax.xlane.f32.xlu1 %v741_v37  ;;  %v491_v29 = vpop.f32.mrb[42].mxu0  ;;  %v183_v10 = vld [vmem:[#allocation4 + $0x168] sm:$0xff] }
 0x190   :  { %3175 = vst [vmem:[#allocation18_spill] sm:$0xff] %v2561_v61  ;;  %v598_v42 = vmul.f32 0.17677669, %v491_v29  ;;  %v493_v56 = vpop.f32.mrb[43].mxu0 }
 0x191   :  { %3176 = vst [vmem:[#allocation19_spill] sm:$0xff] %v2563_v54  ;;  %v599_v60 = vmul.f32 0.17677669, %v493_v56  ;;  %v744_v59 = vmax.f32 %v2561_v61, %v2563_v54  ;;  %v184_v54 = vld [vmem:[#allocation4 + $0x170] sm:$0xff] }
 0x192   :  { %v2567_v57 = vadd.f32 %v598_v42, %v180_v49 }
 0x193   :  { %v2569_v19 = vadd.f32 %v599_v60, %v181_v43  ;;  %745 = vmax.xlane.f32.xlu0 %v744_v59  ;;  %v497_v11 = vpop.f32.mrb[44].mxu0  ;;  %v185_v43 = vld [vmem:[#allocation4 + $0x178] sm:$0xff] }
 0x194   :  { %3177 = vst [vmem:[#allocation20_spill] sm:$0xff] %v2567_v57  ;;  %v600_v7 = vmul.f32 0.17677669, %v497_v11  ;;  %v499_v36 = vpop.f32.mrb[45].mxu0 }
 0x195   :  { %3178 = vst [vmem:[#allocation21_spill] sm:$0xff] %v2569_v19  ;;  %v601_v37 = vmul.f32 0.17677669, %v499_v36  ;;  %v747_v29 = vmax.f32 %v2567_v57, %v2569_v19  ;;  %v186_v19 = vld [vmem:[#allocation4 + $0x180] sm:$0xff] }
 0x196   :  { %v2573_v22 = vadd.f32 %v600_v7, %v182_v13 }
 0x197   :  { %v2575_v56 = vadd.f32 %v601_v37, %v183_v10  ;;  %748 = vmax.xlane.f32.xlu1 %v747_v29  ;;  %v503_v49 = vpop.f32.mrb[46].mxu0  ;;  %v187_v10 = vld [vmem:[#allocation4 + $0x188] sm:$0xff] }
 0x198   :  { %3179 = vst [vmem:[#allocation22_spill] sm:$0xff] %v2573_v22  ;;  %v602_v42 = vmul.f32 0.17677669, %v503_v49  ;;  %v505_v60 = vpop.f32.mrb[47].mxu0 }
 0x199   :  { %3180 = vst [vmem:[#allocation23_spill] sm:$0xff] %v2575_v56  ;;  %v603_v59 = vmul.f32 0.17677669, %v505_v60  ;;  %v750_v11 = vmax.f32 %v2573_v22, %v2575_v56  ;;  %v188_v56 = vld [vmem:[#allocation4 + $0x190] sm:$0xff] }
 0x19a   :  { %v2579_v61 = vadd.f32 %v602_v42, %v184_v54 }
 0x19b   :  { %v2581_v36 = vadd.f32 %v603_v59, %v185_v43  ;;  %751 = vmax.xlane.f32.xlu0 %v750_v11  ;;  %v509_v13 = vpop.f32.mrb[48].mxu0  ;;  %v189_v43 = vld [vmem:[#allocation4 + $0x198] sm:$0xff] }
 0x19c   :  { %3181 = vst [vmem:[#allocation24_spill] sm:$0xff] %v2579_v61  ;;  %v604_v7 = vmul.f32 0.17677669, %v509_v13  ;;  %v511_v37 = vpop.f32.mrb[49].mxu0 }
 0x19d   :  { %3182 = vst [vmem:[#allocation25_spill] sm:$0xff] %v2581_v36  ;;  %v605_v29 = vmul.f32 0.17677669, %v511_v37  ;;  %v753_v49 = vmax.f32 %v2579_v61, %v2581_v36  ;;  %v190_v36 = vld [vmem:[#allocation4 + $0x1a0] sm:$0xff] }
 0x19e   :  { %v2585_v57 = vadd.f32 %v604_v7, %v186_v19 }
 0x19f   :  { %v2587_v60 = vadd.f32 %v605_v29, %v187_v10  ;;  %754 = vmax.xlane.f32.xlu0 %v753_v49  ;;  %v515_v54 = vpop.f32.mrb[50].mxu0  ;;  %v191_v10 = vld [vmem:[#allocation4 + $0x1a8] sm:$0xff] }
 0x1a0   :  { %3183 = vst [vmem:[#allocation26_spill] sm:$0xff] %v2585_v57  ;;  %v606_v42 = vmul.f32 0.17677669, %v515_v54  ;;  %v517_v59 = vpop.f32.mrb[51].mxu0 }
 0x1a1   :  { %3184 = vst [vmem:[#allocation27_spill] sm:$0xff] %v2587_v60  ;;  %v607_v11 = vmul.f32 0.17677669, %v517_v59  ;;  %v756_v13 = vmax.f32 %v2585_v57, %v2587_v60  ;;  %v192_v60 = vld [vmem:[#allocation4 + $0x1b0] sm:$0xff] }
 0x1a2   :  { %v2591_v22 = vadd.f32 %v606_v42, %v188_v56 }
 0x1a3   :  { %v2593_v37 = vadd.f32 %v607_v11, %v189_v43  ;;  %757 = vmax.xlane.f32.xlu0 %v756_v13  ;;  %v521_v19 = vpop.f32.mrb[52].mxu0  ;;  %v193_v43 = vld [vmem:[#allocation4 + $0x1b8] sm:$0xff] }
 0x1a4   :  { %3185 = vst [vmem:[#allocation28_spill] sm:$0xff] %v2591_v22  ;;  %v608_v7 = vmul.f32 0.17677669, %v521_v19  ;;  %v523_v29 = vpop.f32.mrb[53].mxu0 }
 0x1a5   :  { %3186 = vst [vmem:[#allocation29_spill] sm:$0xff] %v2593_v37  ;;  %v609_v49 = vmul.f32 0.17677669, %v523_v29  ;;  %v759_v54 = vmax.f32 %v2591_v22, %v2593_v37  ;;  %v194_v37 = vld [vmem:[#allocation4 + $0x1c0] sm:$0xff] }
 0x1a6   :  { %v2597_v61 = vadd.f32 %v608_v7, %v190_v36 }
 0x1a7   :  { %v2599_v59 = vadd.f32 %v609_v49, %v191_v10  ;;  %760 = vmax.xlane.f32.xlu0 %v759_v54  ;;  %v527_v56 = vpop.f32.mrb[54].mxu0  ;;  %v195_v10 = vld [vmem:[#allocation4 + $0x1c8] sm:$0xff] }
 0x1a8   :  { %3187 = vst [vmem:[#allocation30_spill] sm:$0xff] %v2597_v61  ;;  %v610_v42 = vmul.f32 0.17677669, %v527_v56  ;;  %v529_v11 = vpop.f32.mrb[55].mxu0 }
 0x1a9   :  { %3188 = vst [vmem:[#allocation31_spill] sm:$0xff] %v2599_v59  ;;  %v611_v13 = vmul.f32 0.17677669, %v529_v11  ;;  %v762_v19 = vmax.f32 %v2597_v61, %v2599_v59  ;;  %v196_v59 = vld [vmem:[#allocation4 + $0x1d0] sm:$0xff] }
 0x1aa   :  { %v2603_v57 = vadd.f32 %v610_v42, %v192_v60 }
 0x1ab   :  { %v2605_v29 = vadd.f32 %v611_v13, %v193_v43  ;;  %763 = vmax.xlane.f32.xlu0 %v762_v19  ;;  %v533_v36 = vpop.f32.mrb[56].mxu0  ;;  %v197_v43 = vld [vmem:[#allocation4 + $0x1d8] sm:$0xff] }
 0x1ac   :  { %3189 = vst [vmem:[#allocation32_spill] sm:$0xff] %v2603_v57  ;;  %v612_v7 = vmul.f32 0.17677669, %v533_v36  ;;  %v535_v49 = vpop.f32.mrb[57].mxu0 }
 0x1ad   :  { %3190 = vst [vmem:[#allocation33_spill] sm:$0xff] %v2605_v29  ;;  %v613_v54 = vmul.f32 0.17677669, %v535_v49  ;;  %v765_v56 = vmax.f32 %v2603_v57, %v2605_v29  ;;  %v198_v29 = vld [vmem:[#allocation4 + $0x1e0] sm:$0xff] }
 0x1ae   :  { %v2609_v22 = vadd.f32 %v612_v7, %v194_v37 }
 0x1af   :  { %v2611_v11 = vadd.f32 %v613_v54, %v195_v10  ;;  %766 = vmax.xlane.f32.xlu0 %v765_v56  ;;  %v539_v60 = vpop.f32.mrb[58].mxu0  ;;  %v199_v10 = vld [vmem:[#allocation4 + $0x1e8] sm:$0xff] }
 0x1b0   :  { %3191 = vst [vmem:[#allocation34_spill] sm:$0xff] %v2609_v22  ;;  %v614_v42 = vmul.f32 0.17677669, %v539_v60  ;;  %v541_v13 = vpop.f32.mrb[59].mxu0 }
 0x1b1   :  { %3192 = vst [vmem:[#allocation35_spill] sm:$0xff] %v2611_v11  ;;  %v615_v19 = vmul.f32 0.17677669, %v541_v13  ;;  %v768_v36 = vmax.f32 %v2609_v22, %v2611_v11  ;;  %v200_v11 = vld [vmem:[#allocation4 + $0x1f0] sm:$0xff] }
 0x1b2   :  { %v2615_v61 = vadd.f32 %v614_v42, %v196_v59 }
 0x1b3   :  { %v2617_v49 = vadd.f32 %v615_v19, %v197_v43  ;;  %769 = vmax.xlane.f32.xlu0 %v768_v36  ;;  %v545_v37 = vpop.f32.mrb[60].mxu0  ;;  %v201_v43 = vld [vmem:[#allocation4 + $0x1f8] sm:$0xff] }
 0x1b4   :  { %v616_v7 = vmul.f32 0.17677669, %v545_v37  ;;  %v547_v54 = vpop.f32.mrb[61].mxu0 }
 0x1b5   :  { %v617_v56 = vmul.f32 0.17677669, %v547_v54  ;;  %v771_v60 = vmax.f32 %v2615_v61, %v2617_v49 }
 0x1b6   :  { %v2621_v57 = vadd.f32 %v616_v7, %v198_v29  ;;  %v2060_v7 = vmov 0.0|0.0  }
 0x1b7   :  { %v2623_v13 = vadd.f32 %v617_v56, %v199_v10  ;;  %772 = vmax.xlane.f32.xlu0 %v771_v60  ;;  %v551_v59 = vpop.f32.mrb[62].mxu0  ;;  %1763 = vmatprep.subr.bf16.mxu1 %v2060_v7 }
 0x1b8   :  { %v618_v42 = vmul.f32 0.17677669, %v551_v59  ;;  %v553_v19 = vpop.f32.mrb[63].mxu0  ;;  %1765 = vmatpush1.bf16.msra.mxu1 %v2149_v8 }
 0x1b9   :  { %v619_v36 = vmul.f32 0.17677669, %v553_v19  ;;  %v774_v37 = vmax.f32 %v2621_v57, %v2623_v13  ;;  %1766 = vmatprep.subr.bf16.mxu1 %v2060_v7 }
 0x1ba   :  { %v2627_v22 = vadd.f32 %v618_v42, %v200_v11 }
 0x1bb   :  { %v2629_v54 = vadd.f32 %v619_v36, %v201_v43  ;;  %775 = vmax.xlane.f32.xlu0 %v774_v37 }
 0x1bc   :  { %1768 = vmatpush1.bf16.msra.mxu1 %v2180_v14 }
 0x1bd   :  { %v777_v29 = vmax.f32 %v2627_v22, %v2629_v54  ;;  %1769 = vmatprep.subr.bf16.mxu1 %v2060_v7 }
 0x1bf   :  { %778 = vmax.xlane.f32.xlu0 %v777_v29 }
 0x1c0   :  { %1771 = vmatpush1.bf16.msra.mxu1 %v2208_v20 }
 0x1c1   :  { %1772 = vmatprep.subr.bf16.mxu1 %v2060_v7 }
 0x1c4   :  { %1774 = vmatpush1.bf16.msra.mxu1 %v2236_v26 }
 0x1c5   :  { %1775 = vmatprep.subr.bf16.mxu1 %v2060_v7 }
 0x1c8   :  { %1777 = vmatpush1.bf16.msra.mxu1 %v2264_v32 }
 0x1c9   :  { %1778 = vmatprep.subr.bf16.mxu1 %v2060_v7 }
 0x1cc   :  { %1780 = vmatpush1.bf16.msra.mxu1 %v2292_v38 }
 0x1cd   :  { %1781 = vmatprep.subr.bf16.mxu1 %v2060_v7 }
 0x1d0   :  { %v686_v11 = vpop.xlane.xlu0 %685  ;;  %1783 = vmatpush1.bf16.msra.mxu1 %v2320_v44 }
 0x1d1   :  { %v780_v10 = vsub.f32 %v2441_v55, %v686_v11  ;;  %v781_v56 = vsub.f32 %v2443_v58, %v686_v11  ;;  %1784 = vmatprep.subr.bf16.mxu1 %v2060_v7 }
 0x1d3   :  { %v844_v8 = vmul.f32 1.442695, %v780_v10  ;;  %v846_v60 = vmul.f32 1.442695, %v781_v56 }
 0x1d4   :  { %v689_v59 = vpop.xlane.xlu0 %688  ;;  %1786 = vmatpush1.bf16.msra.mxu1 %v2338_v48 }
 0x1d5   :  { %1816 = vpow2.f32 %v844_v8  ;;  %v782_v14 = vsub.f32 %v2447_v0, %v689_v59  ;;  %v783_v20 = vsub.f32 %v2449_v1, %v689_v59  ;;  %1787 = vmatprep.subr.bf16.mxu1 %v2060_v7 }
 0x1d6   :  { %1818 = vpow2.f32 %v846_v60 }
 0x1d7   :  { %v848_v26 = vmul.f32 1.442695, %v782_v14  ;;  %v850_v42 = vmul.f32 1.442695, %v783_v20 }
 0x1d8   :  { %v692_v55 = vpop.xlane.xlu1 %691  ;;  %1789 = vmatpush1.bf16.msra.mxu1 %v2128_v4 }
 0x1d9   :  { %1820 = vpow2.f32 %v848_v26  ;;  %v784_v58 = vsub.f32 %v2453_v12, %v692_v55  ;;  %v785_v43 = vsub.f32 %v2455_v17, %v692_v55  ;;  %1790 = vmatprep.subr.bf16.mxu1 %v2060_v7 }
 0x1da   :  { %1822 = vpow2.f32 %v850_v42 }
 0x1db   :  { %v852_v32 = vmul.f32 1.442695, %v784_v58  ;;  %v854_v0 = vmul.f32 1.442695, %v785_v43 }
 0x1dc   :  { %v695_v19 = vpop.xlane.xlu1 %694  ;;  %1792 = vmatpush1.bf16.msra.mxu1 %v2153_v9 }
 0x1dd   :  { %1824 = vpow2.f32 %v852_v32  ;;  %v786_v1 = vsub.f32 %v2459_v25, %v695_v19  ;;  %v787_v36 = vsub.f32 %v2461_v28, %v695_v19  ;;  %1793 = vmatprep.subr.bf16.mxu1 %v2060_v7 }
 0x1de   :  { %1826 = vpow2.f32 %v854_v0 }
 0x1df   :  { %v2656_v38 = vpop.eup %1816  ;;  %v856_v12 = vmul.f32 1.442695, %v786_v1  ;;  %v858_v17 = vmul.f32 1.442695, %v787_v36 }
 0x1e0   :  { %v2658_v37 = vpop.eup %1818  ;;  %v698_v29 = vpop.xlane.xlu0 %697  ;;  %1795 = vmatpush1.bf16.msra.mxu1 %v2184_v15 }
 0x1e1   :  { %1828 = vpow2.f32 %v856_v12  ;;  %v788_v44 = vsub.f32 %v2465_v40, %v698_v29  ;;  %v789_v11 = vsub.f32 %v2467_v41, %v698_v29  ;;  %v972_v25 = vadd.f32 %v2658_v37, %v2656_v38  ;;  %1796 = vmatprep.subr.bf16.mxu1 %v2060_v7 }
 0x1e2   :  { %1830 = vpow2.f32 %v858_v17 }
 0x1e3   :  { %v2666_v28 = vpop.eup %1820  ;;  %v860_v10 = vmul.f32 1.442695, %v788_v44  ;;  %v862_v56 = vmul.f32 1.442695, %v789_v11  ;;  %973 = vadd.xlane.f32.xlu1 %v972_v25 }
 0x1e4   :  { %v2668_v8 = vpop.eup %1822  ;;  %v701_v60 = vpop.xlane.xlu1 %700  ;;  %1798 = vmatpush1.bf16.msra.mxu1 %v2212_v21 }
 0x1e5   :  { %1832 = vpow2.f32 %v860_v10  ;;  %v790_v48 = vsub.f32 %v2471_v52, %v701_v60  ;;  %v791_v40 = vsub.f32 %v2473_v53, %v701_v60  ;;  %v975_v41 = vadd.f32 %v2668_v8, %v2666_v28  ;;  %1799 = vmatprep.subr.bf16.mxu1 %v2060_v7 }
 0x1e6   :  { %1834 = vpow2.f32 %v862_v56 }
 0x1e7   :  { %v2676_v59 = vpop.eup %1824  ;;  %v864_v14 = vmul.f32 1.442695, %v790_v48  ;;  %v866_v20 = vmul.f32 1.442695, %v791_v40  ;;  %976 = vadd.xlane.f32.xlu1 %v975_v41 }
 0x1e8   :  { %v2678_v26 = vpop.eup %1826  ;;  %v704_v42 = vpop.xlane.xlu0 %703  ;;  %1801 = vmatpush1.bf16.msra.mxu1 %v2240_v27 }
 0x1e9   :  { %1836 = vpow2.f32 %v864_v14  ;;  %v792_v4 = vsub.f32 %v2477_v63, %v704_v42  ;;  %v793_v52 = vsub.f32 %v2479_v2, %v704_v42  ;;  %v978_v53 = vadd.f32 %v2678_v26, %v2676_v59  ;;  %1802 = vmatprep.subr.bf16.mxu1 %v2060_v7 }
 0x1ea   :  { %1838 = vpow2.f32 %v866_v20 }
 0x1eb   :  { %v2686_v55 = vpop.eup %1828  ;;  %v868_v58 = vmul.f32 1.442695, %v792_v4  ;;  %v870_v43 = vmul.f32 1.442695, %v793_v52  ;;  %979 = vadd.xlane.f32.xlu1 %v978_v53 }
 0x1ec   :  { %v2688_v32 = vpop.eup %1830  ;;  %v707_v0 = vpop.xlane.xlu1 %706  ;;  %1804 = vmatpush1.bf16.msra.mxu1 %v2268_v33 }
 0x1ed   :  { %1840 = vpow2.f32 %v868_v58  ;;  %v794_v9 = vsub.f32 %v2483_v16, %v707_v0  ;;  %v795_v63 = vsub.f32 %v2485_v18, %v707_v0  ;;  %v981_v2 = vadd.f32 %v2688_v32, %v2686_v55  ;;  %1805 = vmatprep.subr.bf16.mxu1 %v2060_v7 }
 0x1ee   :  { %1842 = vpow2.f32 %v870_v43 }
 0x1ef   :  { %v2696_v19 = vpop.eup %1832  ;;  %v872_v1 = vmul.f32 1.442695, %v794_v9  ;;  %v874_v36 = vmul.f32 1.442695, %v795_v63  ;;  %982 = vadd.xlane.f32.xlu1 %v981_v2 }
 0x1f0   :  { %v2698_v12 = vpop.eup %1834  ;;  %v710_v17 = vpop.xlane.xlu0 %709  ;;  %1807 = vmatpush1.bf16.msra.mxu1 %v2296_v39 }
 0x1f1   :  { %1844 = vpow2.f32 %v872_v1  ;;  %v796_v15 = vsub.f32 %v2489_v34, %v710_v17  ;;  %v797_v16 = vsub.f32 %v2491_v35, %v710_v17  ;;  %v984_v18 = vadd.f32 %v2698_v12, %v2696_v19  ;;  %1808 = vmatprep.subr.bf16.mxu1 %v2060_v7 }
 0x1f2   :  { %1846 = vpow2.f32 %v874_v36 }
 0x1f3   :  { %v2706_v29 = vpop.eup %1836  ;;  %v876_v44 = vmul.f32 1.442695, %v796_v15  ;;  %v878_v11 = vmul.f32 1.442695, %v797_v16  ;;  %985 = vadd.xlane.f32.xlu1 %v984_v18 }
 0x1f4   :  { %v2708_v25 = vpop.eup %1838  ;;  %v713_v10 = vpop.xlane.xlu1 %712  ;;  %1810 = vmatpush1.bf16.msra.mxu1 %v2324_v45 }
 0x1f5   :  { %1848 = vpow2.f32 %v876_v44  ;;  %v798_v21 = vsub.f32 %v2495_v50, %v713_v10  ;;  %v799_v34 = vsub.f32 %v2497_v51, %v713_v10  ;;  %v987_v35 = vadd.f32 %v2708_v25, %v2706_v29 }
 0x1f6   :  { %1850 = vpow2.f32 %v878_v11 }
 0x1f7   :  { %v2716_v56 = vpop.eup %1840  ;;  %v880_v60 = vmul.f32 1.442695, %v798_v21  ;;  %v882_v48 = vmul.f32 1.442695, %v799_v34  ;;  %988 = vadd.xlane.f32.xlu1 %v987_v35 }
 0x1f8   :  { %v2718_v40 = vpop.eup %1842  ;;  %v716_v41 = vpop.xlane.xlu0 %715 }
 0x1f9   :  { %1852 = vpow2.f32 %v880_v60  ;;  %v800_v27 = vsub.f32 %v2501_v3, %v716_v41  ;;  %v801_v50 = vsub.f32 %v2503_v5, %v716_v41  ;;  %v990_v51 = vadd.f32 %v2718_v40, %v2716_v56 }
 0x1fa   :  { %1854 = vpow2.f32 %v882_v48  ;;  %v3193_v48 = vld [vmem:[#allocation8_spill] sm:$0xff] }
 0x1fb   :  { %v2726_v14 = vpop.eup %1844  ;;  %v884_v20 = vmul.f32 1.442695, %v800_v27  ;;  %v886_v42 = vmul.f32 1.442695, %v801_v50  ;;  %991 = vadd.xlane.f32.xlu1 %v990_v51  ;;  %v3194_v27 = vld [vmem:[#allocation9_spill] sm:$0xff] }
 0x1fc   :  { %v2728_v4 = vpop.eup %1846  ;;  %v719_v52 = vpop.xlane.xlu1 %718 }
 0x1fd   :  { %1856 = vpow2.f32 %v884_v20  ;;  %v802_v33 = vsub.f32 %v2507_v23, %v719_v52  ;;  %v803_v3 = vsub.f32 %v2509_v24, %v719_v52  ;;  %v993_v5 = vadd.f32 %v2728_v4, %v2726_v14 }
 0x1fe   :  { %1858 = vpow2.f32 %v886_v42 }
 0x1ff   :  { %v2736_v53 = vpop.eup %1848  ;;  %v888_v58 = vmul.f32 1.442695, %v802_v33  ;;  %v890_v43 = vmul.f32 1.442695, %v803_v3  ;;  %994 = vadd.xlane.f32.xlu1 %v993_v5  ;;  %v3195_v33 = vld [vmem:[#allocation10_spill] sm:$0xff]  ;;  %v3196_v5 = vld [vmem:[#allocation11_spill] sm:$0xff] }
 0x200   :  { %v2738_v0 = vpop.eup %1850  ;;  %v722_v9 = vpop.xlane.xlu0 %721 }
 0x201   :  { %1860 = vpow2.f32 %v888_v58  ;;  %v804_v39 = vsub.f32 %v2513_v46, %v722_v9  ;;  %v805_v23 = vsub.f32 %v2515_v47, %v722_v9  ;;  %v996_v24 = vadd.f32 %v2738_v0, %v2736_v53 }
 0x202   :  { %1862 = vpow2.f32 %v890_v43 }
 0x203   :  { %v2745_v7 = vpop.eup %1852  ;;  %v892_v63 = vmul.f32 1.442695, %v804_v39  ;;  %v894_v2 = vmul.f32 1.442695, %v805_v23  ;;  %997 = vadd.xlane.f32.xlu1 %v996_v24 }
 0x204   :  { %v2747_v1 = vpop.eup %1854  ;;  %v725_v36 = vpop.xlane.xlu1 %724 }
 0x205   :  { %1864 = vpow2.f32 %v892_v63  ;;  %v806_v45 = vsub.f32 %v2519_v62, %v725_v36  ;;  %v807_v17 = vsub.f32 %v2521_v6, %v725_v36  ;;  %v999_v46 = vadd.f32 %v2747_v1, %v2745_v7 }
 0x206   :  { %1866 = vpow2.f32 %v894_v2  ;;  %v3197_v2 = vld [vmem:[#allocation12_spill] sm:$0xff] }
 0x207   :  { %v2753_v47 = vpop.eup %1856  ;;  %v896_v15 = vmul.f32 1.442695, %v806_v45  ;;  %v898_v16 = vmul.f32 1.442695, %v807_v17  ;;  %1000 = vadd.xlane.f32.xlu1 %v999_v46  ;;  %v3198_v45 = vld [vmem:[#allocation13_spill] sm:$0xff] }
 0x208   :  { %v2755_v18 = vpop.eup %1858  ;;  %v728_v44 = vpop.xlane.xlu0 %727 }
 0x209   :  { %1868 = vpow2.f32 %v896_v15  ;;  %v808_v11 = vsub.f32 %v2525_v30, %v728_v44  ;;  %v809_v10 = vsub.f32 %v2527_v31, %v728_v44  ;;  %v1002_v62 = vadd.f32 %v2755_v18, %v2753_v47 }
 0x20a   :  { %1870 = vpow2.f32 %v898_v16 }
 0x20b   :  { %v2761_v6 = vpop.eup %1860  ;;  %v900_v21 = vmul.f32 1.442695, %v808_v11  ;;  %v902_v34 = vmul.f32 1.442695, %v809_v10  ;;  %1003 = vadd.xlane.f32.xlu0 %v1002_v62  ;;  %v3199_v62 = vld [vmem:[#allocation14_spill] sm:$0xff] }
 0x20c   :  { %v2763_v35 = vpop.eup %1862  ;;  %v731_v60 = vpop.xlane.xlu1 %730 }
 0x20d   :  { %1872 = vpow2.f32 %v900_v21  ;;  %v810_v41 = vsub.f32 %v3193_v48, %v731_v60  ;;  %v811_v50 = vsub.f32 %v3194_v27, %v731_v60  ;;  %v1005_v30 = vadd.f32 %v2763_v35, %v2761_v6 }
 0x20e   :  { %1874 = vpow2.f32 %v902_v34  ;;  %v3200_v34 = vld [vmem:[#allocation15_spill] sm:$0xff] }
 0x20f   :  { %v2769_v31 = vpop.eup %1864  ;;  %v904_v51 = vmul.f32 1.442695, %v810_v41  ;;  %v906_v20 = vmul.f32 1.442695, %v811_v50  ;;  %1006 = vadd.xlane.f32.xlu1 %v1005_v30 }
 0x210   :  { %v2771_v42 = vpop.eup %1866  ;;  %v734_v52 = vpop.xlane.xlu0 %733 }
 0x211   :  { %1876 = vpow2.f32 %v904_v51  ;;  %v812_v3 = vsub.f32 %v3195_v33, %v734_v52  ;;  %v813_v58 = vsub.f32 %v3196_v5, %v734_v52  ;;  %v1008_v43 = vadd.f32 %v2771_v42, %v2769_v31  ;;  %v3202_v33 = vld [vmem:[#allocation17_spill] sm:$0xff] }
 0x212   :  { %1878 = vpow2.f32 %v906_v20  ;;  %v3201_v20 = vld [vmem:[#allocation16_spill] sm:$0xff] }
 0x213   :  { %v2777_v9 = vpop.eup %1868  ;;  %v908_v39 = vmul.f32 1.442695, %v812_v3  ;;  %v910_v23 = vmul.f32 1.442695, %v813_v58  ;;  %1009 = vadd.xlane.f32.xlu0 %v1008_v43 }
 0x214   :  { %v2779_v24 = vpop.eup %1870  ;;  %v737_v63 = vpop.xlane.xlu1 %736 }
 0x215   :  { %1880 = vpow2.f32 %v908_v39  ;;  %v814_v36 = vsub.f32 %v3197_v2, %v737_v63  ;;  %v815_v17 = vsub.f32 %v3198_v45, %v737_v63  ;;  %v1011_v46 = vadd.f32 %v2779_v24, %v2777_v9  ;;  %v3203_v2 = vld [vmem:[#allocation18_spill] sm:$0xff]  ;;  %v3204_v45 = vld [vmem:[#allocation19_spill] sm:$0xff] }
 0x216   :  { %1882 = vpow2.f32 %v910_v23 }
 0x217   :  { %v2785_v15 = vpop.eup %1872  ;;  %v912_v16 = vmul.f32 1.442695, %v814_v36  ;;  %v914_v44 = vmul.f32 1.442695, %v815_v17  ;;  %1012 = vadd.xlane.f32.xlu1 %v1011_v46 }
 0x218   :  { %v2787_v11 = vpop.eup %1874  ;;  %v740_v10 = vpop.xlane.xlu0 %739 }
 0x219   :  { %1884 = vpow2.f32 %v912_v16  ;;  %v816_v21 = vsub.f32 %v3199_v62, %v740_v10  ;;  %v817_v60 = vsub.f32 %v3200_v34, %v740_v10  ;;  %v1014_v48 = vadd.f32 %v2787_v11, %v2785_v15  ;;  %v3205_v34 = vld [vmem:[#allocation20_spill] sm:$0xff] }
 0x21a   :  { %1886 = vpow2.f32 %v914_v44 }
 0x21b   :  { %v2793_v41 = vpop.eup %1876  ;;  %v916_v27 = vmul.f32 1.442695, %v816_v21  ;;  %v918_v50 = vmul.f32 1.442695, %v817_v60  ;;  %1015 = vadd.xlane.f32.xlu0 %v1014_v48  ;;  %v3206_v48 = vld [vmem:[#allocation21_spill] sm:$0xff] }
 0x21c   :  { %v2795_v30 = vpop.eup %1878  ;;  %v743_v51 = vpop.xlane.xlu1 %742 }
 0x21d   :  { %1888 = vpow2.f32 %v916_v27  ;;  %v818_v52 = vsub.f32 %v3201_v20, %v743_v51  ;;  %v819_v3 = vsub.f32 %v3202_v33, %v743_v51  ;;  %v1017_v5 = vadd.f32 %v2795_v30, %v2793_v41 }
 0x21e   :  { %1890 = vpow2.f32 %v918_v50 }
 0x21f   :  { %v2801_v58 = vpop.eup %1880  ;;  %v920_v43 = vmul.f32 1.442695, %v818_v52  ;;  %v922_v39 = vmul.f32 1.442695, %v819_v3  ;;  %1018 = vadd.xlane.f32.xlu1 %v1017_v5  ;;  %v3207_v5 = vld [vmem:[#allocation22_spill] sm:$0xff] }
 0x220   :  { %v2803_v23 = vpop.eup %1882  ;;  %v746_v63 = vpop.xlane.xlu0 %745 }
 0x221   :  { %1892 = vpow2.f32 %v920_v43  ;;  %v820_v36 = vsub.f32 %v3203_v2, %v746_v63  ;;  %v821_v17 = vsub.f32 %v3204_v45, %v746_v63  ;;  %v1020_v46 = vadd.f32 %v2803_v23, %v2801_v58 }
 0x222   :  { %1894 = vpow2.f32 %v922_v39  ;;  %v3208_v39 = vld [vmem:[#allocation23_spill] sm:$0xff] }
 0x223   :  { %v2809_v16 = vpop.eup %1884  ;;  %v924_v44 = vmul.f32 1.442695, %v820_v36  ;;  %v926_v10 = vmul.f32 1.442695, %v821_v17  ;;  %1021 = vadd.xlane.f32.xlu0 %v1020_v46 }
 0x224   :  { %v2811_v62 = vpop.eup %1886  ;;  %v749_v21 = vpop.xlane.xlu1 %748 }
 0x225   :  { %1896 = vpow2.f32 %v924_v44  ;;  %v822_v60 = vsub.f32 %v3205_v34, %v749_v21  ;;  %v823_v27 = vsub.f32 %v3206_v48, %v749_v21  ;;  %v1023_v50 = vadd.f32 %v2811_v62, %v2809_v16  ;;  %v3210_v34 = vld [vmem:[#allocation25_spill] sm:$0xff] }
 0x226   :  { %1898 = vpow2.f32 %v926_v10  ;;  %v3209_v10 = vld [vmem:[#allocation24_spill] sm:$0xff] }
 0x227   :  { %v2817_v51 = vpop.eup %1888  ;;  %v928_v20 = vmul.f32 1.442695, %v822_v60  ;;  %v930_v52 = vmul.f32 1.442695, %v823_v27  ;;  %1024 = vadd.xlane.f32.xlu1 %v1023_v50 }
 0x228   :  { %v2819_v33 = vpop.eup %1890  ;;  %v752_v3 = vpop.xlane.xlu0 %751 }
 0x229   :  { %1900 = vpow2.f32 %v928_v20  ;;  %v824_v43 = vsub.f32 %v3207_v5, %v752_v3  ;;  %v825_v63 = vsub.f32 %v3208_v39, %v752_v3  ;;  %v1026_v2 = vadd.f32 %v2819_v33, %v2817_v51  ;;  %v3213_v5 = vld [vmem:[#allocation26_spill] sm:$0xff]  ;;  %v3214_v39 = vld [vmem:[#allocation27_spill] sm:$0xff] }
 0x22a   :  { %1902 = vpow2.f32 %v930_v52 }
 0x22b   :  { %v2825_v36 = vpop.eup %1892  ;;  %v932_v45 = vmul.f32 1.442695, %v824_v43  ;;  %v934_v17 = vmul.f32 1.442695, %v825_v63  ;;  %1027 = vadd.xlane.f32.xlu0 %v1026_v2 }
 0x22c   :  { %v2827_v46 = vpop.eup %1894  ;;  %v755_v44 = vpop.xlane.xlu0 %754 }
 0x22d   :  { %1904 = vpow2.f32 %v932_v45  ;;  %v826_v21 = vsub.f32 %v3209_v10, %v755_v44  ;;  %v827_v60 = vsub.f32 %v3210_v34, %v755_v44  ;;  %v1029_v48 = vadd.f32 %v2827_v46, %v2825_v36  ;;  %v3217_v34 = vld [vmem:[#allocation28_spill] sm:$0xff] }
 0x22e   :  { %1906 = vpow2.f32 %v934_v17 }
 0x22f   :  { %v2833_v27 = vpop.eup %1896  ;;  %v936_v50 = vmul.f32 1.442695, %v826_v21  ;;  %v938_v20 = vmul.f32 1.442695, %v827_v60  ;;  %1030 = vadd.xlane.f32.xlu1 %v1029_v48  ;;  %v3218_v48 = vld [vmem:[#allocation29_spill] sm:$0xff] }
 0x230   :  { %3211 = vst [vmem:[#allocation8_spill] sm:$0xff] %v2833_v27  ;;  %v2835_v52 = vpop.eup %1898  ;;  %v758_v3 = vpop.xlane.xlu0 %757 }
 0x231   :  { %3212 = vst [vmem:[#allocation9_spill] sm:$0xff] %v2835_v52  ;;  %1908 = vpow2.f32 %v936_v50  ;;  %v828_v43 = vsub.f32 %v3213_v5, %v758_v3  ;;  %v829_v63 = vsub.f32 %v3214_v39, %v758_v3  ;;  %v1032_v2 = vadd.f32 %v2835_v52, %v2833_v27 }
 0x232   :  { %1910 = vpow2.f32 %v938_v20 }
 0x233   :  { %v2841_v45 = vpop.eup %1900  ;;  %v940_v17 = vmul.f32 1.442695, %v828_v43  ;;  %v942_v44 = vmul.f32 1.442695, %v829_v63  ;;  %1033 = vadd.xlane.f32.xlu0 %v1032_v2  ;;  %v3221_v2 = vld [vmem:[#allocation30_spill] sm:$0xff] }
 0x234   :  { %3215 = vst [vmem:[#allocation10_spill] sm:$0xff] %v2841_v45  ;;  %v2843_v10 = vpop.eup %1902  ;;  %v761_v21 = vpop.xlane.xlu0 %760 }
 0x235   :  { %3216 = vst [vmem:[#allocation11_spill] sm:$0xff] %v2843_v10  ;;  %1912 = vpow2.f32 %v940_v17  ;;  %v830_v60 = vsub.f32 %v3217_v34, %v761_v21  ;;  %v831_v50 = vsub.f32 %v3218_v48, %v761_v21  ;;  %v1035_v3 = vadd.f32 %v2843_v10, %v2841_v45  ;;  %v3222_v17 = vld [vmem:[#allocation31_spill] sm:$0xff] }
 0x236   :  { %1914 = vpow2.f32 %v942_v44 }
 0x237   :  { %v2849_v5 = vpop.eup %1904  ;;  %v944_v20 = vmul.f32 1.442695, %v830_v60  ;;  %v946_v39 = vmul.f32 1.442695, %v831_v50  ;;  %1036 = vadd.xlane.f32.xlu1 %v1035_v3  ;;  %v3223_v3 = vld [vmem:[#allocation32_spill] sm:$0xff] }
 0x238   :  { %3219 = vst [vmem:[#allocation12_spill] sm:$0xff] %v2849_v5  ;;  %v2851_v43 = vpop.eup %1906  ;;  %v764_v63 = vpop.xlane.xlu0 %763 }
 0x239   :  { %3220 = vst [vmem:[#allocation13_spill] sm:$0xff] %v2851_v43  ;;  %1916 = vpow2.f32 %v944_v20  ;;  %v832_v52 = vsub.f32 %v3221_v2, %v764_v63  ;;  %v833_v27 = vsub.f32 %v3222_v17, %v764_v63  ;;  %v1038_v21 = vadd.f32 %v2851_v43, %v2849_v5  ;;  %v3224_v20 = vld [vmem:[#allocation33_spill] sm:$0xff] }
 0x23a   :  { %1918 = vpow2.f32 %v946_v39 }
 0x23b   :  { %v2857_v34 = vpop.eup %1908  ;;  %v948_v44 = vmul.f32 1.442695, %v832_v52  ;;  %v950_v48 = vmul.f32 1.442695, %v833_v27  ;;  %1039 = vadd.xlane.f32.xlu0 %v1038_v21  ;;  %v3225_v21 = vld [vmem:[#allocation34_spill] sm:$0xff] }
 0x23c   :  { %v2859_v60 = vpop.eup %1910  ;;  %v767_v50 = vpop.xlane.xlu0 %766 }
 0x23d   :  { %1920 = vpow2.f32 %v948_v44  ;;  %v834_v10 = vsub.f32 %v3223_v3, %v767_v50  ;;  %v835_v45 = vsub.f32 %v3224_v20, %v767_v50  ;;  %v1041_v63 = vadd.f32 %v2859_v60, %v2857_v34  ;;  %v3226_v44 = vld [vmem:[#allocation35_spill] sm:$0xff] }
 0x23e   :  { %1922 = vpow2.f32 %v950_v48 }
 0x23f   :  { %v2865_v2 = vpop.eup %1912  ;;  %v952_v39 = vmul.f32 1.442695, %v834_v10  ;;  %v954_v17 = vmul.f32 1.442695, %v835_v45  ;;  %1042 = vadd.xlane.f32.xlu1 %v1041_v63 }
 0x240   :  { %v2867_v52 = vpop.eup %1914  ;;  %v770_v27 = vpop.xlane.xlu0 %769 }
 0x241   :  { %1924 = vpow2.f32 %v952_v39  ;;  %v836_v43 = vsub.f32 %v3225_v21, %v770_v27  ;;  %v837_v5 = vsub.f32 %v3226_v44, %v770_v27  ;;  %v1044_v50 = vadd.f32 %v2867_v52, %v2865_v2 }
 0x242   :  { %1926 = vpow2.f32 %v954_v17 }
 0x243   :  { %v2873_v3 = vpop.eup %1916  ;;  %v956_v48 = vmul.f32 1.442695, %v836_v43  ;;  %v958_v20 = vmul.f32 1.442695, %v837_v5  ;;  %1045 = vadd.xlane.f32.xlu0 %v1044_v50 }
 0x244   :  { %v2875_v10 = vpop.eup %1918  ;;  %v773_v45 = vpop.xlane.xlu0 %772 }
 0x245   :  { %1928 = vpow2.f32 %v956_v48  ;;  %v838_v63 = vsub.f32 %v2615_v61, %v773_v45  ;;  %v839_v39 = vsub.f32 %v2617_v49, %v773_v45  ;;  %v1047_v27 = vadd.f32 %v2875_v10, %v2873_v3 }
 0x246   :  { %1930 = vpow2.f32 %v958_v20 }
 0x247   :  { %v2881_v21 = vpop.eup %1920  ;;  %v960_v17 = vmul.f32 1.442695, %v838_v63  ;;  %v962_v44 = vmul.f32 1.442695, %v839_v39  ;;  %1048 = vadd.xlane.f32.xlu1 %v1047_v27 }
 0x248   :  { %3227 = vst [vmem:[#allocation14_spill] sm:$0xff] %v2881_v21  ;;  %v2883_v43 = vpop.eup %1922  ;;  %v776_v5 = vpop.xlane.xlu0 %775 }
 0x249   :  { %3228 = vst [vmem:[#allocation15_spill] sm:$0xff] %v2883_v43  ;;  %1932 = vpow2.f32 %v960_v17  ;;  %v840_v50 = vsub.f32 %v2621_v57, %v776_v5  ;;  %v841_v48 = vsub.f32 %v2623_v13, %v776_v5  ;;  %v1050_v61 = vadd.f32 %v2883_v43, %v2881_v21 }
 0x24a   :  { %1934 = vpow2.f32 %v962_v44 }
 0x24b   :  { %v2889_v49 = vpop.eup %1924  ;;  %v964_v20 = vmul.f32 1.442695, %v840_v50  ;;  %v966_v45 = vmul.f32 1.442695, %v841_v48  ;;  %1051 = vadd.xlane.f32.xlu0 %v1050_v61 }
 0x24c   :  { %3229 = vst [vmem:[#allocation16_spill] sm:$0xff] %v2889_v49  ;;  %v2891_v63 = vpop.eup %1926  ;;  %v779_v39 = vpop.xlane.xlu0 %778 }
 0x24d   :  { %3230 = vst [vmem:[#allocation17_spill] sm:$0xff] %v2891_v63  ;;  %1936 = vpow2.f32 %v964_v20  ;;  %v842_v27 = vsub.f32 %v2627_v22, %v779_v39  ;;  %v843_v17 = vsub.f32 %v2629_v54, %v779_v39  ;;  %v1053_v57 = vadd.f32 %v2891_v63, %v2889_v49 }
 0x24e   :  { %1938 = vpow2.f32 %v966_v45 }
 0x24f   :  { %v2897_v13 = vpop.eup %1928  ;;  %v968_v44 = vmul.f32 1.442695, %v842_v27  ;;  %v970_v5 = vmul.f32 1.442695, %v843_v17  ;;  %1054 = vadd.xlane.f32.xlu1 %v1053_v57 }
 0x250   :  { %3231 = vst [vmem:[#allocation18_spill] sm:$0xff] %v2897_v13  ;;  %v2899_v50 = vpop.eup %1930 }
 0x251   :  { %3232 = vst [vmem:[#allocation19_spill] sm:$0xff] %v2899_v50  ;;  %1940 = vpow2.f32 %v968_v44  ;;  %v1056_v48 = vadd.f32 %v2899_v50, %v2897_v13 }
 0x252   :  { %1942 = vpow2.f32 %v970_v5 }
 0x253   :  { %v2903_v61 = vpop.eup %1932  ;;  %1057 = vadd.xlane.f32.xlu0 %v1056_v48 }
 0x254   :  { %3233 = vst [vmem:[#allocation20_spill] sm:$0xff] %v2903_v61  ;;  %v2905_v22 = vpop.eup %1934 }
 0x255   :  { %3234 = vst [vmem:[#allocation21_spill] sm:$0xff] %v2905_v22  ;;  %v1059_v54 = vadd.f32 %v2905_v22, %v2903_v61 }
 0x257   :  { %v2909_v20 = vpop.eup %1936  ;;  %1060 = vadd.xlane.f32.xlu1 %v1059_v54 }
 0x258   :  { %3235 = vst [vmem:[#allocation22_spill] sm:$0xff] %v2909_v20  ;;  %v2911_v45 = vpop.eup %1938 }
 0x259   :  { %3236 = vst [vmem:[#allocation23_spill] sm:$0xff] %v2911_v45  ;;  %v1062_v39 = vadd.f32 %v2911_v45, %v2909_v20  ;;  %v75_v45 = vld [vmem:[#allocation2 + $0x8] sm:$0xff]  ;;  %v74_v20 = vld [vmem:[#allocation2] sm:$0xff] }
 0x25b   :  { %v2915_v27 = vpop.eup %1940  ;;  %1063 = vadd.xlane.f32.xlu0 %v1062_v39 }
 0x25c   :  { %3237 = vst [vmem:[#allocation24_spill] sm:$0xff] %v2915_v27  ;;  %v2917_v17 = vpop.eup %1942 }
 0x25d   :  { %3238 = vst [vmem:[#allocation25_spill] sm:$0xff] %v2917_v17  ;;  %v1065_v57 = vadd.f32 %v2917_v17, %v2915_v27 }
 0x25f   :  { %1066 = vadd.xlane.f32.xlu1 %v1065_v57 }
 0x270   :  { %v974_v44 = vpop.xlane.xlu1 %973 }
 0x271   :  { %1944 = vrcp.f32 %v974_v44  ;;  %v77_v44 = vld [vmem:[#allocation2 + $0x18] sm:$0xff] }
 0x274   :  { %v977_v5 = vpop.xlane.xlu1 %976 }
 0x275   :  { %1946 = vrcp.f32 %v977_v5  ;;  %v76_v5 = vld [vmem:[#allocation2 + $0x10] sm:$0xff] }
 0x278   :  { %v980_v48 = vpop.xlane.xlu1 %979 }
 0x279   :  { %1948 = vrcp.f32 %v980_v48 }
 0x27b   :  { %v1945_v54 = vpop.eup %1944 }
 0x27c   :  { %v1100_v22 = vmul.f32 0.17677669, %v1945_v54  ;;  %v983_v61 = vpop.xlane.xlu1 %982 }
 0x27d   :  { %1950 = vrcp.f32 %v983_v61 }
 0x27e   :  { %v1132_v39 = vmul.f32 %v2656_v38, %v1100_v22  ;;  %v1133_v50 = vmul.f32 %v2658_v37, %v1100_v22  ;;  %v79_v37 = vld [vmem:[#allocation2 + $0x28] sm:$0xff] }
 0x27f   :  { %v1947_v13 = vpop.eup %1946 }
 0x280   :  { %v1101_v63 = vmul.f32 0.17677669, %v1947_v13  ;;  %v986_v17 = vpop.xlane.xlu1 %985  ;;  %v1197_v57 = vmul.f32 %v1133_v50, %v75_v45  ;;  %v1196_v27 = vmul.f32 %v1132_v39, %v74_v20  ;;  %v78_v13 = vld [vmem:[#allocation2 + $0x20] sm:$0xff] }
 0x281   :  { %1952 = vrcp.f32 %v986_v17  ;;  %v80_v17 = vld [vmem:[#allocation2 + $0x30] sm:$0xff] }
 0x282   :  { %v1134_v48 = vmul.f32 %v2666_v28, %v1101_v63  ;;  %v1135_v54 = vmul.f32 %v2668_v8, %v1101_v63  ;;  %1324 = vmatprep.mubr.f32.mxu1 %v1197_v57 }
 0x283   :  { %v1949_v61 = vpop.eup %1948  ;;  %1325 = vmatmul.mubr.f32.vlgmr.msra.gmra.mrb[0].mxu1 %v1196_v27  ;;  %v81_v27 = vld [vmem:[#allocation2 + $0x38] sm:$0xff] }
 0x284   :  { %v1102_v49 = vmul.f32 0.17677669, %v1949_v61  ;;  %v989_v43 = vpop.xlane.xlu1 %988  ;;  %v1199_v38 = vmul.f32 %v1135_v54, %v77_v44  ;;  %v1198_v21 = vmul.f32 %v1134_v48, %v76_v5  ;;  %v82_v5 = vld [vmem:[#allocation2 + $0x40] sm:$0xff] }
 0x285   :  { %1954 = vrcp.f32 %v989_v43 }
 0x286   :  { %v1136_v50 = vmul.f32 %v2676_v59, %v1102_v49  ;;  %v1137_v22 = vmul.f32 %v2678_v26, %v1102_v49  ;;  %1329 = vmatprep.mubr.f32.mxu1 %v1199_v38 }
 0x287   :  { %v1951_v20 = vpop.eup %1950  ;;  %1330 = vmatmul.mubr.f32.gmra.mrb[2].mxu1 %v1198_v21  ;;  %v83_v21 = vld [vmem:[#allocation2 + $0x48] sm:$0xff] }
 0x288   :  { %v1103_v28 = vmul.f32 0.17677669, %v1951_v20  ;;  %v992_v45 = vpop.xlane.xlu1 %991  ;;  %v1201_v8 = vmul.f32 %v1137_v22, %v79_v37  ;;  %v1200_v63 = vmul.f32 %v1136_v50, %v78_v13  ;;  %v85_v13 = vld [vmem:[#allocation2 + $0x58] sm:$0xff]  ;;  %v84_v50 = vld [vmem:[#allocation2 + $0x50] sm:$0xff] }
 0x289   :  { %1956 = vrcp.f32 %v992_v45 }
 0x28a   :  { %v1138_v39 = vmul.f32 %v2686_v55, %v1103_v28  ;;  %v1139_v43 = vmul.f32 %v2688_v32, %v1103_v28  ;;  %1334 = vmatprep.mubr.f32.mxu1 %v1201_v8 }
 0x28b   :  { %v1953_v57 = vpop.eup %1952  ;;  %1335 = vmatmul.mubr.f32.gmra.mrb[4].mxu1 %v1200_v63  ;;  %v87_v63 = vld [vmem:[#allocation2 + $0x68] sm:$0xff] }
 0x28c   :  { %v1104_v59 = vmul.f32 0.17677669, %v1953_v57  ;;  %v995_v44 = vpop.xlane.xlu1 %994  ;;  %v1203_v26 = vmul.f32 %v1139_v43, %v81_v27  ;;  %v1202_v49 = vmul.f32 %v1138_v39, %v80_v17  ;;  %v86_v27 = vld [vmem:[#allocation2 + $0x60] sm:$0xff] }
 0x28d   :  { %1958 = vrcp.f32 %v995_v44  ;;  %v89_v44 = vld [vmem:[#allocation2 + $0x78] sm:$0xff] }
 0x28e   :  { %v1140_v48 = vmul.f32 %v2696_v19, %v1104_v59  ;;  %v1141_v54 = vmul.f32 %v2698_v12, %v1104_v59  ;;  %1339 = vmatprep.mubr.f32.mxu1 %v1203_v26  ;;  %v88_v26 = vld [vmem:[#allocation2 + $0x70] sm:$0xff] }
 0x28f   :  { %v1955_v61 = vpop.eup %1954  ;;  %1340 = vmatmul.mubr.f32.gmra.mrb[6].mxu1 %v1202_v49 }
 0x290   :  { %v1105_v55 = vmul.f32 0.17677669, %v1955_v61  ;;  %v998_v38 = vpop.xlane.xlu1 %997  ;;  %v1205_v32 = vmul.f32 %v1141_v54, %v83_v21  ;;  %v1204_v37 = vmul.f32 %v1140_v48, %v82_v5  ;;  %v91_v61 = vld [vmem:[#allocation2 + $0x88] sm:$0xff] }
 0x291   :  { %1960 = vrcp.f32 %v998_v38 }
 0x292   :  { %v1142_v22 = vmul.f32 %v2706_v29, %v1105_v55  ;;  %v1143_v20 = vmul.f32 %v2708_v25, %v1105_v55  ;;  %1344 = vmatprep.mubr.f32.mxu1 %v1205_v32  ;;  %v90_v55 = vld [vmem:[#allocation2 + $0x80] sm:$0xff] }
 0x293   :  { %v1957_v28 = vpop.eup %1956  ;;  %1345 = vmatmul.mubr.f32.gmra.mrb[8].mxu1 %v1204_v37 }
 0x294   :  { %v1106_v19 = vmul.f32 0.17677669, %v1957_v28  ;;  %v1001_v45 = vpop.xlane.xlu1 %1000  ;;  %v1207_v12 = vmul.f32 %v1143_v20, %v85_v13  ;;  %v1206_v8 = vmul.f32 %v1142_v22, %v84_v50  ;;  %v93_v22 = vld [vmem:[#allocation2 + $0x98] sm:$0xff]  ;;  %v92_v20 = vld [vmem:[#allocation2 + $0x90] sm:$0xff] }
 0x295   :  { %1962 = vrcp.f32 %v1001_v45 }
 0x296   :  { %v1144_v17 = vmul.f32 %v2716_v56, %v1106_v19  ;;  %v1145_v39 = vmul.f32 %v2718_v40, %v1106_v19  ;;  %1349 = vmatprep.mubr.f32.mxu1 %v1207_v12 }
 0x297   :  { %v1959_v43 = vpop.eup %1958  ;;  %1350 = vmatmul.mubr.f32.gmra.mrb[10].mxu1 %v1206_v8 }
 0x298   :  { %v1107_v29 = vmul.f32 0.17677669, %v1959_v43  ;;  %v1004_v57 = vpop.xlane.xlu0 %1003  ;;  %v1209_v25 = vmul.f32 %v1145_v39, %v87_v63  ;;  %v1208_v59 = vmul.f32 %v1144_v17, %v86_v27  ;;  %v95_v63 = vld [vmem:[#allocation2 + $0xa8] sm:$0xff]  ;;  %v94_v27 = vld [vmem:[#allocation2 + $0xa0] sm:$0xff] }
 0x299   :  { %1964 = vrcp.f32 %v1004_v57 }
 0x29a   :  { %v1146_v49 = vmul.f32 %v2726_v14, %v1107_v29  ;;  %v1147_v21 = vmul.f32 %v2728_v4, %v1107_v29  ;;  %1354 = vmatprep.mubr.f32.mxu1 %v1209_v25  ;;  %v97_v25 = vld [vmem:[#allocation2 + $0xb8] sm:$0xff] }
 0x29b   :  { %v1961_v5 = vpop.eup %1960  ;;  %1355 = vmatmul.mubr.f32.gmra.mrb[12].mxu1 %v1208_v59  ;;  %v96_v59 = vld [vmem:[#allocation2 + $0xb0] sm:$0xff] }
 0x29c   :  { %v1108_v56 = vmul.f32 0.17677669, %v1961_v5  ;;  %v1007_v48 = vpop.xlane.xlu1 %1006  ;;  %v1211_v40 = vmul.f32 %v1147_v21, %v89_v44  ;;  %v1210_v54 = vmul.f32 %v1146_v49, %v88_v26 }
 0x29d   :  { %1966 = vrcp.f32 %v1007_v48  ;;  %v98_v48 = vld [vmem:[#allocation2 + $0xc0] sm:$0xff] }
 0x29e   :  { %v1148_v38 = vmul.f32 %v2736_v53, %v1108_v56  ;;  %v1149_v32 = vmul.f32 %v2738_v0, %v1108_v56  ;;  %1359 = vmatprep.mubr.f32.mxu1 %v1211_v40  ;;  %v99_v56 = vld [vmem:[#allocation2 + $0xc8] sm:$0xff] }
 0x29f   :  { %v1963_v37 = vpop.eup %1962  ;;  %1360 = vmatmul.mubr.f32.gmra.mrb[14].mxu1 %v1210_v54 }
 0x2a0   :  { %v1109_v14 = vmul.f32 0.17677669, %v1963_v37  ;;  %v1010_v13 = vpop.xlane.xlu0 %1009  ;;  %v1213_v4 = vmul.f32 %v1149_v32, %v91_v61  ;;  %v1212_v50 = vmul.f32 %v1148_v38, %v90_v55  ;;  %v101_v32 = vld [vmem:[#allocation2 + $0xd8] sm:$0xff]  ;;  %v100_v37 = vld [vmem:[#allocation2 + $0xd0] sm:$0xff] }
 0x2a1   :  { %1968 = vrcp.f32 %v1010_v13 }
 0x2a2   :  { %v1150_v28 = vmul.f32 %v2745_v7, %v1109_v14  ;;  %v1151_v19 = vmul.f32 %v2747_v1, %v1109_v14  ;;  %1364 = vmatprep.mubr.f32.mxu1 %v1213_v4 }
 0x2a3   :  { %v1965_v45 = vpop.eup %1964  ;;  %1365 = vmatmul.mubr.f32.gmra.mrb[16].mxu1 %v1212_v50 }
 0x2a4   :  { %v1110_v53 = vmul.f32 0.17677669, %v1965_v45  ;;  %v1013_v12 = vpop.xlane.xlu1 %1012  ;;  %v1215_v0 = vmul.f32 %v1151_v19, %v93_v22  ;;  %v1214_v8 = vmul.f32 %v1150_v28, %v92_v20  ;;  %v103_v20 = vld [vmem:[#allocation2 + $0xe8] sm:$0xff]  ;;  %v102_v28 = vld [vmem:[#allocation2 + $0xe0] sm:$0xff] }
 0x2a5   :  { %1970 = vrcp.f32 %v1013_v12 }
 0x2a6   :  { %v1152_v17 = vmul.f32 %v2753_v47, %v1110_v53  ;;  %v1153_v39 = vmul.f32 %v2755_v18, %v1110_v53  ;;  %1369 = vmatprep.mubr.f32.mxu1 %v1215_v0 }
 0x2a7   :  { %v1967_v43 = vpop.eup %1966  ;;  %1370 = vmatmul.mubr.f32.gmra.mrb[18].mxu1 %v1214_v8  ;;  %v105_v8 = vld [vmem:[#allocation2 + $0xf8] sm:$0xff] }
 0x2a8   :  { %v1111_v7 = vmul.f32 0.17677669, %v1967_v43  ;;  %v1016_v29 = vpop.xlane.xlu0 %1015  ;;  %v1217_v1 = vmul.f32 %v1153_v39, %v95_v63  ;;  %v1216_v57 = vmul.f32 %v1152_v17, %v94_v27  ;;  %v104_v63 = vld [vmem:[#allocation2 + $0xf0] sm:$0xff] }
 0x2a9   :  { %1972 = vrcp.f32 %v1016_v29  ;;  %v107_v29 = vld [vmem:[#allocation2 + $0x108] sm:$0xff] }
 0x2aa   :  { %v1154_v44 = vmul.f32 %v2761_v6, %v1111_v7  ;;  %v1155_v26 = vmul.f32 %v2763_v35, %v1111_v7  ;;  %1374 = vmatprep.mubr.f32.mxu1 %v1217_v1  ;;  %v106_v1 = vld [vmem:[#allocation2 + $0x100] sm:$0xff] }
 0x2ab   :  { %v1969_v49 = vpop.eup %1968  ;;  %1375 = vmatmul.mubr.f32.gmra.mrb[20].mxu1 %v1216_v57 }
 0x2ac   :  { %v1112_v47 = vmul.f32 0.17677669, %v1969_v49  ;;  %v1019_v21 = vpop.xlane.xlu1 %1018  ;;  %v1219_v18 = vmul.f32 %v1155_v26, %v97_v25  ;;  %v1218_v5 = vmul.f32 %v1154_v44, %v96_v59  ;;  %v109_v49 = vld [vmem:[#allocation2 + $0x118] sm:$0xff] }
 0x2ad   :  { %1974 = vrcp.f32 %v1019_v21 }
 0x2ae   :  { %v1156_v40 = vmul.f32 %v2769_v31, %v1112_v47  ;;  %v1157_v54 = vmul.f32 %v2771_v42, %v1112_v47  ;;  %1379 = vmatprep.mubr.f32.mxu1 %v1219_v18  ;;  %v108_v47 = vld [vmem:[#allocation2 + $0x110] sm:$0xff] }
 0x2af   :  { %v1971_v61 = vpop.eup %1970  ;;  %1380 = vmatmul.mubr.f32.gmra.mrb[22].mxu1 %v1218_v5 }
 0x2b0   :  { %v1113_v6 = vmul.f32 0.17677669, %v1971_v61  ;;  %v1022_v55 = vpop.xlane.xlu0 %1021  ;;  %v1221_v35 = vmul.f32 %v1157_v54, %v99_v56  ;;  %v1220_v38 = vmul.f32 %v1156_v40, %v98_v48  ;;  %v111_v40 = vld [vmem:[#allocation2 + $0x128] sm:$0xff]  ;;  %v110_v54 = vld [vmem:[#allocation2 + $0x120] sm:$0xff] }
 0x2b1   :  { %1976 = vrcp.f32 %v1022_v55 }
 0x2b2   :  { %v1158_v14 = vmul.f32 %v2777_v9, %v1113_v6  ;;  %v1159_v13 = vmul.f32 %v2779_v24, %v1113_v6  ;;  %1384 = vmatprep.mubr.f32.mxu1 %v1221_v35 }
 0x2b3   :  { %v1973_v4 = vpop.eup %1972  ;;  %1385 = vmatmul.mubr.f32.gmra.mrb[24].mxu1 %v1220_v38 }
 0x2b4   :  { %v1114_v31 = vmul.f32 0.17677669, %v1973_v4  ;;  %v1025_v50 = vpop.xlane.xlu1 %1024  ;;  %v1223_v42 = vmul.f32 %v1159_v13, %v101_v32  ;;  %v1222_v22 = vmul.f32 %v1158_v14, %v100_v37  ;;  %v113_v32 = vld [vmem:[#allocation2 + $0x138] sm:$0xff]  ;;  %v112_v37 = vld [vmem:[#allocation2 + $0x130] sm:$0xff] }
 0x2b5   :  { %1978 = vrcp.f32 %v1025_v50 }
 0x2b6   :  { %v1160_v19 = vmul.f32 %v2785_v15, %v1114_v31  ;;  %v1161_v45 = vmul.f32 %v2787_v11, %v1114_v31  ;;  %1389 = vmatprep.mubr.f32.mxu1 %v1223_v42  ;;  %v115_v42 = vld [vmem:[#allocation2 + $0x148] sm:$0xff] }
 0x2b7   :  { %v1975_v53 = vpop.eup %1974  ;;  %1390 = vmatmul.mubr.f32.gmra.mrb[26].mxu1 %v1222_v22  ;;  %v114_v22 = vld [vmem:[#allocation2 + $0x140] sm:$0xff] }
 0x2b8   :  { %v1115_v9 = vmul.f32 0.17677669, %v1975_v53  ;;  %v1028_v12 = vpop.xlane.xlu0 %1027  ;;  %v1225_v24 = vmul.f32 %v1161_v45, %v103_v20  ;;  %v1224_v0 = vmul.f32 %v1160_v19, %v102_v28  ;;  %v3239_v20 = vld [vmem:[#allocation8_spill] sm:$0xff]  ;;  %v3240_v19 = vld [vmem:[#allocation9_spill] sm:$0xff] }
 0x2b9   :  { %1980 = vrcp.f32 %v1028_v12 }
 0x2ba   :  { %v1162_v27 = vmul.f32 %v2793_v41, %v1115_v9  ;;  %v1163_v17 = vmul.f32 %v2795_v30, %v1115_v9  ;;  %1394 = vmatprep.mubr.f32.mxu1 %v1225_v24  ;;  %v117_v24 = vld [vmem:[#allocation2 + $0x158] sm:$0xff] }
 0x2bb   :  { %v1977_v39 = vpop.eup %1976  ;;  %1395 = vmatmul.mubr.f32.gmra.mrb[28].mxu1 %v1224_v0  ;;  %v116_v0 = vld [vmem:[#allocation2 + $0x150] sm:$0xff] }
 0x2bc   :  { %v1116_v15 = vmul.f32 0.17677669, %v1977_v39  ;;  %v1031_v43 = vpop.xlane.xlu1 %1030  ;;  %v1227_v11 = vmul.f32 %v1163_v17, %v105_v8  ;;  %v1226_v7 = vmul.f32 %v1162_v27, %v104_v63  ;;  %v3241_v8 = vld [vmem:[#allocation10_spill] sm:$0xff]  ;;  %v3242_v27 = vld [vmem:[#allocation11_spill] sm:$0xff] }
 0x2bd   :  { %1982 = vrcp.f32 %v1031_v43 }
 0x2be   :  { %v1164_v57 = vmul.f32 %v2801_v58, %v1116_v15  ;;  %v1165_v25 = vmul.f32 %v2803_v23, %v1116_v15  ;;  %1399 = vmatprep.mubr.f32.mxu1 %v1227_v11 }
 0x2bf   :  { %v1979_v59 = vpop.eup %1978  ;;  %1400 = vmatmul.mubr.f32.gmra.mrb[30].mxu1 %v1226_v7 }
 0x2c0   :  { %v1117_v41 = vmul.f32 0.17677669, %v1979_v59  ;;  %v1034_v44 = vpop.xlane.xlu0 %1033  ;;  %v1229_v30 = vmul.f32 %v1165_v25, %v107_v29  ;;  %v1228_v26 = vmul.f32 %v1164_v57, %v106_v1  ;;  %v119_v29 = vld [vmem:[#allocation2 + $0x168] sm:$0xff]  ;;  %v118_v1 = vld [vmem:[#allocation2 + $0x160] sm:$0xff] }
 0x2c1   :  { %1984 = vrcp.f32 %v1034_v44  ;;  %v3243_v57 = vld [vmem:[#allocation12_spill] sm:$0xff]  ;;  %v3244_v59 = vld [vmem:[#allocation13_spill] sm:$0xff] }
 0x2c2   :  { %v1166_v21 = vmul.f32 %v2809_v16, %v1117_v41  ;;  %v1167_v18 = vmul.f32 %v2811_v62, %v1117_v41  ;;  %1404 = vmatprep.mubr.f32.mxu1 %v1229_v30 }
 0x2c3   :  { %v1981_v5 = vpop.eup %1980  ;;  %1405 = vmatmul.mubr.f32.gmra.mrb[32].mxu1 %v1228_v26 }
 0x2c4   :  { %v1118_v58 = vmul.f32 0.17677669, %v1981_v5  ;;  %v1037_v56 = vpop.xlane.xlu1 %1036  ;;  %v1231_v23 = vmul.f32 %v1167_v18, %v109_v49  ;;  %v1230_v48 = vmul.f32 %v1166_v21, %v108_v47  ;;  %v121_v21 = vld [vmem:[#allocation2 + $0x178] sm:$0xff]  ;;  %v120_v18 = vld [vmem:[#allocation2 + $0x170] sm:$0xff] }
 0x2c5   :  { %1986 = vrcp.f32 %v1037_v56 }
 0x2c6   :  { %v1168_v61 = vmul.f32 %v2817_v51, %v1118_v58  ;;  %v1169_v6 = vmul.f32 %v2819_v33, %v1118_v58  ;;  %1409 = vmatprep.mubr.f32.mxu1 %v1231_v23 }
 0x2c7   :  { %v1983_v55 = vpop.eup %1982  ;;  %1410 = vmatmul.mubr.f32.gmra.mrb[34].mxu1 %v1230_v48 }
 0x2c8   :  { %v1119_v16 = vmul.f32 0.17677669, %v1983_v55  ;;  %v1040_v35 = vpop.xlane.xlu0 %1039  ;;  %v1233_v62 = vmul.f32 %v1169_v6, %v111_v40  ;;  %v1232_v38 = vmul.f32 %v1168_v61, %v110_v54  ;;  %v123_v61 = vld [vmem:[#allocation2 + $0x188] sm:$0xff]  ;;  %v122_v6 = vld [vmem:[#allocation2 + $0x180] sm:$0xff] }
 0x2c9   :  { %1988 = vrcp.f32 %v1040_v35 }
 0x2ca   :  { %v1170_v14 = vmul.f32 %v2825_v36, %v1119_v16  ;;  %v1171_v13 = vmul.f32 %v2827_v46, %v1119_v16  ;;  %1414 = vmatprep.mubr.f32.mxu1 %v1233_v62 }
 0x2cb   :  { %v1985_v4 = vpop.eup %1984  ;;  %1415 = vmatmul.mubr.f32.gmra.mrb[36].mxu1 %v1232_v38 }
 0x2cc   :  { %v1120_v51 = vmul.f32 0.17677669, %v1985_v4  ;;  %v1043_v31 = vpop.xlane.xlu1 %1042  ;;  %v1235_v33 = vmul.f32 %v1171_v13, %v113_v32  ;;  %v1234_v50 = vmul.f32 %v1170_v14, %v112_v37  ;;  %v125_v32 = vld [vmem:[#allocation2 + $0x198] sm:$0xff]  ;;  %v124_v37 = vld [vmem:[#allocation2 + $0x190] sm:$0xff] }
 0x2cd   :  { %1990 = vrcp.f32 %v1043_v31 }
 0x2ce   :  { %v1172_v28 = vmul.f32 %v3239_v20, %v1120_v51  ;;  %v1173_v45 = vmul.f32 %v3240_v19, %v1120_v51  ;;  %1419 = vmatprep.mubr.f32.mxu1 %v1235_v33  ;;  %v127_v33 = vld [vmem:[#allocation2 + $0x1a8] sm:$0xff]  ;;  %v3246_v20 = vld [vmem:[#allocation15_spill] sm:$0xff] }
 0x2cf   :  { %v1987_v53 = vpop.eup %1986  ;;  %1420 = vmatmul.mubr.f32.gmra.mrb[38].mxu1 %v1234_v50  ;;  %v126_v50 = vld [vmem:[#allocation2 + $0x1a0] sm:$0xff] }
 0x2d0   :  { %v1121_v36 = vmul.f32 0.17677669, %v1987_v53  ;;  %v1046_v9 = vpop.xlane.xlu0 %1045  ;;  %v1237_v46 = vmul.f32 %v1173_v45, %v115_v42  ;;  %v1236_v12 = vmul.f32 %v1172_v28, %v114_v22  ;;  %v3245_v42 = vld [vmem:[#allocation14_spill] sm:$0xff] }
 0x2d1   :  { %1992 = vrcp.f32 %v1046_v9  ;;  %v128_v9 = vld [vmem:[#allocation2 + $0x1b0] sm:$0xff] }
 0x2d2   :  { %v1174_v63 = vmul.f32 %v3241_v8, %v1121_v36  ;;  %v1175_v17 = vmul.f32 %v3242_v27, %v1121_v36  ;;  %1424 = vmatprep.mubr.f32.mxu1 %v1237_v46  ;;  %v129_v36 = vld [vmem:[#allocation2 + $0x1b8] sm:$0xff]  ;;  %v3247_v46 = vld [vmem:[#allocation16_spill] sm:$0xff] }
 0x2d3   :  { %v1989_v39 = vpop.eup %1988  ;;  %1425 = vmatmul.mubr.f32.gmra.mrb[40].mxu1 %v1236_v12 }
 0x2d4   :  { %v1122_v15 = vmul.f32 0.17677669, %v1989_v39  ;;  %v1049_v43 = vpop.xlane.xlu1 %1048  ;;  %v1239_v11 = vmul.f32 %v1175_v17, %v117_v24  ;;  %v1238_v7 = vmul.f32 %v1174_v63, %v116_v0  ;;  %v3248_v24 = vld [vmem:[#allocation17_spill] sm:$0xff] }
 0x2d5   :  { %1994 = vrcp.f32 %v1049_v43  ;;  %v130_v43 = vld [vmem:[#allocation2 + $0x1c0] sm:$0xff] }
 0x2d6   :  { %v1176_v25 = vmul.f32 %v3243_v57, %v1122_v15  ;;  %v1177_v41 = vmul.f32 %v3244_v59, %v1122_v15  ;;  %1429 = vmatprep.mubr.f32.mxu1 %v1239_v11  ;;  %v131_v15 = vld [vmem:[#allocation2 + $0x1c8] sm:$0xff]  ;;  %v3249_v11 = vld [vmem:[#allocation18_spill] sm:$0xff] }
 0x2d7   :  { %v1991_v44 = vpop.eup %1990  ;;  %1430 = vmatmul.mubr.f32.gmra.mrb[42].mxu1 %v1238_v7 }
 0x2d8   :  { %v1123_v30 = vmul.f32 0.17677669, %v1991_v44  ;;  %v1052_v26 = vpop.xlane.xlu0 %1051  ;;  %v1241_v49 = vmul.f32 %v1177_v41, %v119_v29  ;;  %v1240_v47 = vmul.f32 %v1176_v25, %v118_v1  ;;  %v3250_v29 = vld [vmem:[#allocation19_spill] sm:$0xff] }
 0x2d9   :  { %1996 = vrcp.f32 %v1052_v26  ;;  %v133_v44 = vld [vmem:[#allocation2 + $0x1d8] sm:$0xff]  ;;  %v3251_v26 = vld [vmem:[#allocation20_spill] sm:$0xff] }
 0x2da   :  { %v1178_v5 = vmul.f32 %v2857_v34, %v1123_v30  ;;  %v1179_v58 = vmul.f32 %v2859_v60, %v1123_v30  ;;  %1434 = vmatprep.mubr.f32.mxu1 %v1241_v49  ;;  %v132_v30 = vld [vmem:[#allocation2 + $0x1d0] sm:$0xff] }
 0x2db   :  { %v1993_v56 = vpop.eup %1992  ;;  %1435 = vmatmul.mubr.f32.gmra.mrb[44].mxu1 %v1240_v47  ;;  %v3252_v47 = vld [vmem:[#allocation21_spill] sm:$0xff] }
 0x2dc   :  { %v1124_v23 = vmul.f32 0.17677669, %v1993_v56  ;;  %v1055_v48 = vpop.xlane.xlu1 %1054  ;;  %v1243_v40 = vmul.f32 %v1179_v58, %v121_v21  ;;  %v1242_v54 = vmul.f32 %v1178_v5, %v120_v18 }
 0x2dd   :  { %1998 = vrcp.f32 %v1055_v48  ;;  %v134_v48 = vld [vmem:[#allocation2 + $0x1e0] sm:$0xff] }
 0x2de   :  { %v1180_v55 = vmul.f32 %v2865_v2, %v1124_v23  ;;  %v1181_v16 = vmul.f32 %v2867_v52, %v1124_v23  ;;  %1439 = vmatprep.mubr.f32.mxu1 %v1243_v40  ;;  %v135_v23 = vld [vmem:[#allocation2 + $0x1e8] sm:$0xff]  ;;  %v3253_v40 = vld [vmem:[#allocation22_spill] sm:$0xff] }
 0x2df   :  { %v1995_v35 = vpop.eup %1994  ;;  %1440 = vmatmul.mubr.f32.gmra.mrb[46].mxu1 %v1242_v54 }
 0x2e0   :  { %v1125_v34 = vmul.f32 0.17677669, %v1995_v35  ;;  %v1058_v62 = vpop.xlane.xlu0 %1057  ;;  %v1245_v60 = vmul.f32 %v1181_v16, %v123_v61  ;;  %v1244_v38 = vmul.f32 %v1180_v55, %v122_v6  ;;  %v3254_v61 = vld [vmem:[#allocation23_spill] sm:$0xff] }
 0x2e1   :  { %2000 = vrcp.f32 %v1058_v62  ;;  %v137_v62 = vld [vmem:[#allocation2 + $0x1f8] sm:$0xff] }
 0x2e2   :  { %v1182_v14 = vmul.f32 %v2873_v3, %v1125_v34  ;;  %v1183_v13 = vmul.f32 %v2875_v10, %v1125_v34  ;;  %1444 = vmatprep.mubr.f32.mxu1 %v1245_v60  ;;  %v136_v60 = vld [vmem:[#allocation2 + $0x1f0] sm:$0xff] }
 0x2e3   :  { %v1997_v4 = vpop.eup %1996  ;;  %1445 = vmatmul.mubr.f32.gmra.mrb[48].mxu1 %v1244_v38  ;;  %v3255_v38 = vld [vmem:[#allocation24_spill] sm:$0xff] }
 0x2e4   :  { %v1126_v2 = vmul.f32 0.17677669, %v1997_v4  ;;  %v1061_v51 = vpop.xlane.xlu1 %1060  ;;  %v1247_v52 = vmul.f32 %v1183_v13, %v125_v32  ;;  %v1246_v31 = vmul.f32 %v1182_v14, %v124_v37  ;;  %v3256_v37 = vld [vmem:[#allocation25_spill] sm:$0xff] }
 0x2e5   :  { %2002 = vrcp.f32 %v1061_v51 }
 0x2e6   :  { %v1184_v22 = vmul.f32 %v3245_v42, %v1126_v2  ;;  %v1185_v28 = vmul.f32 %v3246_v20, %v1126_v2  ;;  %1449 = vmatprep.mubr.f32.mxu1 %v1247_v52 }
 0x2e7   :  { %v1999_v19 = vpop.eup %1998  ;;  %1450 = vmatmul.mubr.f32.gmra.mrb[50].mxu1 %v1246_v31 }
 0x2e8   :  { %v1127_v3 = vmul.f32 0.17677669, %v1999_v19  ;;  %v1064_v45 = vpop.xlane.xlu0 %1063  ;;  %v1249_v10 = vmul.f32 %v1185_v28, %v127_v33  ;;  %v1248_v53 = vmul.f32 %v1184_v22, %v126_v50 }
 0x2e9   :  { %2004 = vrcp.f32 %v1064_v45 }
 0x2ea   :  { %v1186_v12 = vmul.f32 %v3247_v46, %v1127_v3  ;;  %v1187_v0 = vmul.f32 %v3248_v24, %v1127_v3  ;;  %1454 = vmatprep.mubr.f32.mxu1 %v1249_v10 }
 0x2eb   :  { %v2001_v8 = vpop.eup %2000  ;;  %1455 = vmatmul.mubr.f32.gmra.mrb[52].mxu1 %v1248_v53 }
 0x2ec   :  { %v1128_v63 = vmul.f32 0.17677669, %v2001_v8  ;;  %v1067_v27 = vpop.xlane.xlu1 %1066  ;;  %v1251_v17 = vmul.f32 %v1187_v0, %v129_v36  ;;  %v1250_v39 = vmul.f32 %v1186_v12, %v128_v9 }
 0x2ed   :  { %2006 = vrcp.f32 %v1067_v27 }
 0x2ee   :  { %v1188_v7 = vmul.f32 %v3249_v11, %v1128_v63  ;;  %v1189_v1 = vmul.f32 %v3250_v29, %v1128_v63  ;;  %1459 = vmatprep.mubr.f32.mxu1 %v1251_v17 }
 0x2ef   :  { %v2003_v57 = vpop.eup %2002  ;;  %1460 = vmatmul.mubr.f32.gmra.mrb[54].mxu1 %v1250_v39 }
 0x2f0   :  { %v1129_v25 = vmul.f32 0.17677669, %v2003_v57  ;;  %v1253_v59 = vmul.f32 %v1189_v1, %v131_v15  ;;  %v1252_v41 = vmul.f32 %v1188_v7, %v130_v43 }
 0x2f2   :  { %v1190_v49 = vmul.f32 %v3251_v26, %v1129_v25  ;;  %v1191_v21 = vmul.f32 %v3252_v47, %v1129_v25  ;;  %1464 = vmatprep.mubr.f32.mxu1 %v1253_v59 }
 0x2f3   :  { %v2005_v18 = vpop.eup %2004  ;;  %1465 = vmatmul.mubr.f32.gmra.mrb[56].mxu1 %v1252_v41 }
 0x2f4   :  { %v1130_v5 = vmul.f32 0.17677669, %v2005_v18  ;;  %v1255_v58 = vmul.f32 %v1191_v21, %v133_v44  ;;  %v1254_v56 = vmul.f32 %v1190_v49, %v132_v30 }
 0x2f6   :  { %v1192_v54 = vmul.f32 %v3253_v40, %v1130_v5  ;;  %v1193_v6 = vmul.f32 %v3254_v61, %v1130_v5  ;;  %1469 = vmatprep.mubr.f32.mxu1 %v1255_v58 }
 0x2f7   :  { %v2007_v55 = vpop.eup %2006  ;;  %1470 = vmatmul.mubr.f32.gmra.mrb[58].mxu1 %v1254_v56 }
 0x2f8   :  { %v1131_v16 = vmul.f32 0.17677669, %v2007_v55  ;;  %v1257_v35 = vmul.f32 %v1193_v6, %v135_v23  ;;  %v1256_v34 = vmul.f32 %v1192_v54, %v134_v48 }
 0x2fa   :  { %v1194_v32 = vmul.f32 %v3255_v38, %v1131_v16  ;;  %v1195_v14 = vmul.f32 %v3256_v37, %v1131_v16  ;;  %1474 = vmatprep.mubr.f32.mxu1 %v1257_v35 }
 0x2fb   :  { %1475 = vmatmul.mubr.f32.gmra.mrb[60].mxu1 %v1256_v34 }
 0x2fc   :  { %v1259_v13 = vmul.f32 %v1195_v14, %v137_v62  ;;  %v1258_v4 = vmul.f32 %v1194_v32, %v136_v60 }
 0x2fe   :  { %1479 = vmatprep.mubr.f32.mxu1 %v1259_v13 }
 0x2ff   :  { %1480 = vmatmul.mubr.f32.gmra.mrb[62].mxu1 %v1258_v4 }
 0x356   :  { %v1326_v2 = vpop.f32.mrb[0].mxu1 }
 0x357   :  { %v1485_v51 = vmax.f32 %v1326_v2, 0.0  ;;  %v1328_v52 = vpop.f32.mrb[1].mxu1 }
 0x359   :  { %1517 = vst.msk [vmem:[%s3116_s3] sm:$0xff] %vm202_vm0, %v1485_v51 }
 0x35a   :  { %v1331_v31 = vpop.f32.mrb[2].mxu1 }
 0x35b   :  { %v1486_v33 = vmax.f32 %v1331_v31, 0.0  ;;  %v1333_v50 = vpop.f32.mrb[3].mxu1 }
 0x35d   :  { %1518 = vst.msk [vmem:[%s3116_s3 + $0x8] sm:$0xff] %vm202_vm0, %v1486_v33 }
 0x35e   :  { %v1336_v42 = vpop.f32.mrb[4].mxu1 }
 0x35f   :  { %v1487_v22 = vmax.f32 %v1336_v42, 0.0  ;;  %v1338_v20 = vpop.f32.mrb[5].mxu1 }
 0x361   :  { %1519 = vst.msk [vmem:[%s3116_s3 + $0x10] sm:$0xff] %vm202_vm0, %v1487_v22 }
 0x362   :  { %v1341_v28 = vpop.f32.mrb[6].mxu1 }
 0x363   :  { %v1488_v19 = vmax.f32 %v1341_v28, 0.0  ;;  %v1343_v3 = vpop.f32.mrb[7].mxu1 }
 0x365   :  { %1520 = vst.msk [vmem:[%s3116_s3 + $0x18] sm:$0xff] %vm202_vm0, %v1488_v19 }
 0x366   :  { %v1346_v45 = vpop.f32.mrb[8].mxu1 }
 0x367   :  { %v1489_v10 = vmax.f32 %v1346_v45, 0.0  ;;  %v1348_v53 = vpop.f32.mrb[9].mxu1 }
 0x369   :  { %1521 = vst.msk [vmem:[%s3116_s3 + $0x20] sm:$0xff] %vm202_vm0, %v1489_v10 }
 0x36a   :  { %v1351_v36 = vpop.f32.mrb[10].mxu1 }
 0x36b   :  { %v1490_v9 = vmax.f32 %v1351_v36, 0.0  ;;  %v1353_v46 = vpop.f32.mrb[11].mxu1 }
 0x36d   :  { %1522 = vst.msk [vmem:[%s3116_s3 + $0x28] sm:$0xff] %vm202_vm0, %v1490_v9 }
 0x36e   :  { %v1356_v12 = vpop.f32.mrb[12].mxu1 }
 0x36f   :  { %v1491_v24 = vmax.f32 %v1356_v12, 0.0  ;;  %v1358_v0 = vpop.f32.mrb[13].mxu1 }
 0x371   :  { %1523 = vst.msk [vmem:[%s3116_s3 + $0x30] sm:$0xff] %vm202_vm0, %v1491_v24 }
 0x372   :  { %v1361_v8 = vpop.f32.mrb[14].mxu1 }
 0x373   :  { %v1492_v63 = vmax.f32 %v1361_v8, 0.0  ;;  %v1363_v27 = vpop.f32.mrb[15].mxu1 }
 0x375   :  { %1524 = vst.msk [vmem:[%s3116_s3 + $0x38] sm:$0xff] %vm202_vm0, %v1492_v63 }
 0x376   :  { %v1366_v17 = vpop.f32.mrb[16].mxu1 }
 0x377   :  { %v1493_v39 = vmax.f32 %v1366_v17, 0.0  ;;  %v1368_v15 = vpop.f32.mrb[17].mxu1 }
 0x379   :  { %1525 = vst.msk [vmem:[%s3116_s3 + $0x40] sm:$0xff] %vm202_vm0, %v1493_v39 }
 0x37a   :  { %v1371_v43 = vpop.f32.mrb[18].mxu1 }
 0x37b   :  { %v1494_v11 = vmax.f32 %v1371_v43, 0.0  ;;  %v1373_v7 = vpop.f32.mrb[19].mxu1 }
 0x37d   :  { %1526 = vst.msk [vmem:[%s3116_s3 + $0x48] sm:$0xff] %vm202_vm0, %v1494_v11 }
 0x37e   :  { %v1376_v29 = vpop.f32.mrb[20].mxu1 }
 0x37f   :  { %v1495_v1 = vmax.f32 %v1376_v29, 0.0  ;;  %v1378_v57 = vpop.f32.mrb[21].mxu1 }
 0x381   :  { %1527 = vst.msk [vmem:[%s3116_s3 + $0x50] sm:$0xff] %vm202_vm0, %v1495_v1 }
 0x382   :  { %v1381_v25 = vpop.f32.mrb[22].mxu1 }
 0x383   :  { %v1496_v59 = vmax.f32 %v1381_v25, 0.0  ;;  %v1383_v41 = vpop.f32.mrb[23].mxu1 }
 0x385   :  { %1528 = vst.msk [vmem:[%s3116_s3 + $0x58] sm:$0xff] %vm202_vm0, %v1496_v59 }
 0x386   :  { %v1386_v44 = vpop.f32.mrb[24].mxu1 }
 0x387   :  { %v1497_v30 = vmax.f32 %v1386_v44, 0.0  ;;  %v1388_v26 = vpop.f32.mrb[25].mxu1 }
 0x389   :  { %1529 = vst.msk [vmem:[%s3116_s3 + $0x60] sm:$0xff] %vm202_vm0, %v1497_v30 }
 0x38a   :  { %v1391_v49 = vpop.f32.mrb[26].mxu1 }
 0x38b   :  { %v1498_v47 = vmax.f32 %v1391_v49, 0.0  ;;  %v1393_v21 = vpop.f32.mrb[27].mxu1 }
 0x38d   :  { %1530 = vst.msk [vmem:[%s3116_s3 + $0x68] sm:$0xff] %vm202_vm0, %v1498_v47 }
 0x38e   :  { %v1396_v18 = vpop.f32.mrb[28].mxu1 }
 0x38f   :  { %v1499_v5 = vmax.f32 %v1396_v18, 0.0  ;;  %v1398_v58 = vpop.f32.mrb[29].mxu1 }
 0x391   :  { %1531 = vst.msk [vmem:[%s3116_s3 + $0x70] sm:$0xff] %vm202_vm0, %v1499_v5 }
 0x392   :  { %v1401_v56 = vpop.f32.mrb[30].mxu1 }
 0x393   :  { %v1500_v23 = vmax.f32 %v1401_v56, 0.0  ;;  %v1403_v48 = vpop.f32.mrb[31].mxu1 }
 0x395   :  { %1532 = vst.msk [vmem:[%s3116_s3 + $0x78] sm:$0xff] %vm202_vm0, %v1500_v23 }
 0x396   :  { %v1406_v40 = vpop.f32.mrb[32].mxu1 }
 0x397   :  { %v1501_v54 = vmax.f32 %v1406_v40, 0.0  ;;  %v1408_v61 = vpop.f32.mrb[33].mxu1 }
 0x399   :  { %1533 = vst.msk [vmem:[%s3116_s3 + $0x80] sm:$0xff] %vm202_vm0, %v1501_v54 }
 0x39a   :  { %v1411_v6 = vpop.f32.mrb[34].mxu1 }
 0x39b   :  { %v1502_v55 = vmax.f32 %v1411_v6, 0.0  ;;  %v1413_v16 = vpop.f32.mrb[35].mxu1 }
 0x39d   :  { %1534 = vst.msk [vmem:[%s3116_s3 + $0x88] sm:$0xff] %vm202_vm0, %v1502_v55 }
 0x39e   :  { %v1416_v35 = vpop.f32.mrb[36].mxu1 }
 0x39f   :  { %v1503_v34 = vmax.f32 %v1416_v35, 0.0  ;;  %v1418_v62 = vpop.f32.mrb[37].mxu1 }
 0x3a1   :  { %1535 = vst.msk [vmem:[%s3116_s3 + $0x90] sm:$0xff] %vm202_vm0, %v1503_v34 }
 0x3a2   :  { %v1421_v60 = vpop.f32.mrb[38].mxu1 }
 0x3a3   :  { %v1504_v38 = vmax.f32 %v1421_v60, 0.0  ;;  %v1423_v32 = vpop.f32.mrb[39].mxu1 }
 0x3a5   :  { %1536 = vst.msk [vmem:[%s3116_s3 + $0x98] sm:$0xff] %vm202_vm0, %v1504_v38 }
 0x3a6   :  { %v1426_v37 = vpop.f32.mrb[40].mxu1 }
 0x3a7   :  { %v1505_v14 = vmax.f32 %v1426_v37, 0.0  ;;  %v1428_v13 = vpop.f32.mrb[41].mxu1 }
 0x3a9   :  { %1537 = vst.msk [vmem:[%s3116_s3 + $0xa0] sm:$0xff] %vm202_vm0, %v1505_v14 }
 0x3aa   :  { %v1431_v4 = vpop.f32.mrb[42].mxu1 }
 0x3ab   :  { %v1506_v2 = vmax.f32 %v1431_v4, 0.0  ;;  %v1433_v51 = vpop.f32.mrb[43].mxu1 }
 0x3ad   :  { %1538 = vst.msk [vmem:[%s3116_s3 + $0xa8] sm:$0xff] %vm202_vm0, %v1506_v2 }
 0x3ae   :  { %v1436_v52 = vpop.f32.mrb[44].mxu1 }
 0x3af   :  { %v1507_v31 = vmax.f32 %v1436_v52, 0.0  ;;  %v1438_v33 = vpop.f32.mrb[45].mxu1 }
 0x3b1   :  { %1539 = vst.msk [vmem:[%s3116_s3 + $0xb0] sm:$0xff] %vm202_vm0, %v1507_v31 }
 0x3b2   :  { %v1441_v50 = vpop.f32.mrb[46].mxu1 }
 0x3b3   :  { %v1508_v42 = vmax.f32 %v1441_v50, 0.0  ;;  %v1443_v22 = vpop.f32.mrb[47].mxu1 }
 0x3b5   :  { %1540 = vst.msk [vmem:[%s3116_s3 + $0xb8] sm:$0xff] %vm202_vm0, %v1508_v42 }
 0x3b6   :  { %v1446_v20 = vpop.f32.mrb[48].mxu1 }
 0x3b7   :  { %v1509_v28 = vmax.f32 %v1446_v20, 0.0  ;;  %v1448_v19 = vpop.f32.mrb[49].mxu1 }
 0x3b9   :  { %1541 = vst.msk [vmem:[%s3116_s3 + $0xc0] sm:$0xff] %vm202_vm0, %v1509_v28 }
 0x3ba   :  { %v1451_v3 = vpop.f32.mrb[50].mxu1 }
 0x3bb   :  { %v1510_v45 = vmax.f32 %v1451_v3, 0.0  ;;  %v1453_v10 = vpop.f32.mrb[51].mxu1 }
 0x3bd   :  { %1542 = vst.msk [vmem:[%s3116_s3 + $0xc8] sm:$0xff] %vm202_vm0, %v1510_v45 }
 0x3be   :  { %v1456_v53 = vpop.f32.mrb[52].mxu1 }
 0x3bf   :  { %v1511_v36 = vmax.f32 %v1456_v53, 0.0  ;;  %v1458_v9 = vpop.f32.mrb[53].mxu1 }
 0x3c1   :  { %1543 = vst.msk [vmem:[%s3116_s3 + $0xd0] sm:$0xff] %vm202_vm0, %v1511_v36 }
 0x3c2   :  { %v1461_v46 = vpop.f32.mrb[54].mxu1 }
 0x3c3   :  { %v1512_v12 = vmax.f32 %v1461_v46, 0.0  ;;  %v1463_v24 = vpop.f32.mrb[55].mxu1 }
 0x3c5   :  { %1544 = vst.msk [vmem:[%s3116_s3 + $0xd8] sm:$0xff] %vm202_vm0, %v1512_v12 }
 0x3c6   :  { %v1466_v0 = vpop.f32.mrb[56].mxu1 }
 0x3c7   :  { %v1513_v8 = vmax.f32 %v1466_v0, 0.0  ;;  %v1468_v63 = vpop.f32.mrb[57].mxu1 }
 0x3c9   :  { %1545 = vst.msk [vmem:[%s3116_s3 + $0xe0] sm:$0xff] %vm202_vm0, %v1513_v8 }
 0x3ca   :  { %v1471_v27 = vpop.f32.mrb[58].mxu1 }
 0x3cb   :  { %v1514_v17 = vmax.f32 %v1471_v27, 0.0  ;;  %v1473_v39 = vpop.f32.mrb[59].mxu1 }
 0x3cd   :  { %1546 = vst.msk [vmem:[%s3116_s3 + $0xe8] sm:$0xff] %vm202_vm0, %v1514_v17 }
 0x3ce   :  { %v1476_v15 = vpop.f32.mrb[60].mxu1 }
 0x3cf   :  { %v1515_v43 = vmax.f32 %v1476_v15, 0.0  ;;  %v1478_v11 = vpop.f32.mrb[61].mxu1 }
 0x3d1   :  { %1547 = vst.msk [vmem:[%s3116_s3 + $0xf0] sm:$0xff] %vm202_vm0, %v1515_v43 }
 0x3d2   :  { %v1481_v7 = vpop.f32.mrb[62].mxu1 }
 0x3d3   :  { %v1516_v29 = vmax.f32 %v1481_v7, 0.0  ;;  %v1483_v1 = vpop.f32.mrb[63].mxu1 }
 0x3d5   :  { %1548 = vst.msk [vmem:[%s3116_s3 + $0xf8] sm:$0xff] %vm202_vm0, %v1516_v29 }
 0x3d6   :  { %1553 = vsyncpa [#allocation3], 1 }
 0x3d7   :  { %1554 = vsyncpa [#allocation5], 1 }

</bundles_post_ra>
